<compile_context>
chip_gen: v5e
topology: v5e:2x2
jax: 0.10.0
libtpu: 0.0.40
codegen_flags: <defaults>
</compile_context>

<pallas_src>
import functools

import jax
import jax.numpy as jnp
from jax.experimental import pallas as pl
from jax.experimental.pallas import tpu as pltpu


def _round_up(x, m):
    return (x + m - 1) // m * m


def _pick_strip(H, W, target_elems=256):
    """Largest divisor s of H with (s*W) % 8 == 0 and s*W <= target_elems.

    Falls back to the full image (s = H), which is always legal because the
    block then equals the full flattened spatial dim.
    """
    cands = [s for s in range(1, H + 1) if H % s == 0 and (s * W) % 8 == 0]
    if not cands:
        return H
    small = [s for s in cands if s * W <= target_elems]
    return max(small) if small else min(cands)


def _conv3x3_kernel(xpad_ref, w_ref, b_ref, o_ref, *, strip, W, act):
    """One (batch, cout-tile, row-strip) grid step.

    xpad_ref: (1, H+2, W+2, Cin)  bf16  -- whole padded image, resident per batch
    w_ref:    (9, Cin, TCOUT)     bf16  -- tap-major weight tile
    b_ref:    (1, TCOUT)          f32
    o_ref:    (1, strip*W, TCOUT) out dtype (flat, lane-dense)
    """
    Cin = w_ref.shape[1]
    TCOUT = w_ref.shape[2]

    r = pl.program_id(2)               # row-strip index (innermost grid axis)
    row0 = r * strip
    if strip % 8 == 0:
        row0 = pl.multiple_of(row0, strip)

    acc = jnp.zeros((strip * W, TCOUT), jnp.float32)
    # 3x3 conv == 9 shifted bf16 matmuls accumulated in f32 (static unroll).
    for tap in range(9):
        dy, dx = tap // 3, tap % 3
        patch = xpad_ref[0, pl.ds(row0 + dy, strip), dx:dx + W, :]
        patch = patch.reshape(strip * W, Cin)
        acc += jnp.dot(patch, w_ref[tap], preferred_element_type=jnp.float32)

    acc = acc + b_ref[...]             # (1, TCOUT) broadcast, f32
    if act == "relu":
        acc = jnp.maximum(acc, 0.0)
    elif act == "sigmoid":
        acc = jax.nn.sigmoid(acc)

    o_ref[0] = acc.astype(o_ref.dtype)


def conv3x3(x_nhwc, w_torch, b, act, *, out_dtype=jnp.float32, cout_tile=128,
            target_strip_elems=256):
    """3x3 conv, stride 1, padding 1, fused bias + activation (Pallas TPU).

    x_nhwc:  (B, H, W, Cin)
    w_torch: (Cout, Cin, 3, 3)  (PyTorch nn.Conv2d layout)
    b:       (Cout,)
    act:     'relu' | 'sigmoid' | 'none'
    returns  (B, H, W, Cout) in `out_dtype`
    """
    B, H, W, Cin = x_nhwc.shape
    Cout = w_torch.shape[0]
    Cout_pad = _round_up(Cout, 128)          # lane-dense output channels
    TCOUT = min(cout_tile, Cout_pad)
    strip = _pick_strip(H, W, target_strip_elems)
    R = H // strip
    C = Cout_pad // TCOUT

    # Repack weights tap-major, zero-pad Cout to a multiple of 128, cast bf16.
    w_k = jnp.transpose(w_torch, (2, 3, 1, 0)).reshape(9, Cin, Cout)
    if Cout_pad != Cout:
        w_k = jnp.pad(w_k, ((0, 0), (0, 0), (0, Cout_pad - Cout)))
        b = jnp.pad(b, (0, Cout_pad - Cout))
    w_k = w_k.astype(jnp.bfloat16)
    b_k = b.astype(jnp.float32).reshape(1, Cout_pad)

    # 1-pixel zero halo, bf16 activations feed the MXU.
    xpad = jnp.pad(x_nhwc.astype(jnp.bfloat16), ((0, 0), (1, 1), (1, 1), (0, 0)))

    kernel = functools.partial(_conv3x3_kernel, strip=strip, W=W, act=act)

    y = pl.pallas_call(
        kernel,
        out_shape=jax.ShapeDtypeStruct((B, H * W, Cout_pad), out_dtype),
        grid_spec=pltpu.PrefetchScalarGridSpec(
            num_scalar_prefetch=0,
            # row-strip innermost: padded image resident per batch element,
            # weight tile resident per cout tile.
            grid=(B, C, R),
            in_specs=[
                pl.BlockSpec((1, H + 2, W + 2, Cin),
                             lambda b_, c_, r_: (b_, 0, 0, 0)),
                pl.BlockSpec((9, Cin, TCOUT), lambda b_, c_, r_: (0, 0, c_)),
                pl.BlockSpec((1, TCOUT), lambda b_, c_, r_: (0, c_)),
            ],
            out_specs=pl.BlockSpec((1, strip * W, TCOUT),
                                   lambda b_, c_, r_: (b_, r_, c_)),
        ),
        compiler_params=pltpu.CompilerParams(
            dimension_semantics=("parallel", "parallel", "parallel"),
            vmem_limit_bytes=64 * 1024 * 1024),
    )(xpad, w_k, b_k)

    # Drop lane padding (important before sigmoid outputs are consumed) and
    # restore NHWC; for Cout already a multiple of 128 this is a no-op slice.
    if Cout_pad != Cout:
        y = y[:, :, :Cout]
    return y.reshape(B, H, W, Cout)


class ClassificationModelPallas:
    """JAX/Pallas port of retinanet ClassificationModel (forward only)."""

    def __init__(self, num_features_in, num_anchors=9, num_classes=80,
                 prior=0.01, feature_size=256, key=None):
        self.num_classes = num_classes
        self.num_anchors = num_anchors
        if key is None:
            key = jax.random.PRNGKey(0)

        def conv_params(key, cin, cout):
            kw, kb = jax.random.split(key)
            w = 0.05 * jax.random.normal(kw, (cout, cin, 3, 3), jnp.float32)
            bb = 0.05 * jax.random.normal(kb, (cout,), jnp.float32)
            return w, bb

        keys = jax.random.split(key, 5)
        self.w1, self.b1 = conv_params(keys[0], num_features_in, feature_size)
        self.w2, self.b2 = conv_params(keys[1], feature_size, feature_size)
        self.w3, self.b3 = conv_params(keys[2], feature_size, feature_size)
        self.w4, self.b4 = conv_params(keys[3], feature_size, feature_size)
        self.w5, self.b5 = conv_params(keys[4], feature_size,
                                       num_anchors * num_classes)

    def __call__(self, x_nchw):
        # NCHW (PyTorch convention) -> NHWC for the kernels.
        x = jnp.transpose(x_nchw, (0, 2, 3, 1))
        out = conv3x3(x, self.w1, self.b1, "relu", out_dtype=jnp.bfloat16)
        out = conv3x3(out, self.w2, self.b2, "relu", out_dtype=jnp.bfloat16)
        out = conv3x3(out, self.w3, self.b3, "relu", out_dtype=jnp.bfloat16)
        out = conv3x3(out, self.w4, self.b4, "relu", out_dtype=jnp.bfloat16)
        out = conv3x3(out, self.w5, self.b5, "sigmoid", out_dtype=jnp.float32)
        # out is NHWC == torch's out.permute(0, 2, 3, 1); then
        # view(B, H, W, A, C).view(B, -1, C) == flat reshape.
        B = out.shape[0]
        return out.reshape(B, -1, self.num_classes)


def _reference_forward(model, x_nchw):
    """Pure-JAX reference mirroring the kernel's bf16-in / f32-accumulate path."""

    def as_bf16(x):
        return x.astype(jnp.bfloat16).astype(jnp.float32)

    def conv(x, w, b):
        y = jax.lax.conv_general_dilated(
            as_bf16(x), as_bf16(w), window_strides=(1, 1), padding="SAME",
            dimension_numbers=("NCHW", "OIHW", "NCHW"),
            preferred_element_type=jnp.float32,
            precision=jax.lax.Precision.HIGHEST)
        return y + b[None, :, None, None]

    out = as_bf16(jax.nn.relu(conv(x_nchw, model.w1, model.b1)))
    out = as_bf16(jax.nn.relu(conv(out, model.w2, model.b2)))
    out = as_bf16(jax.nn.relu(conv(out, model.w3, model.b3)))
    out = as_bf16(jax.nn.relu(conv(out, model.w4, model.b4)))
    out = jax.nn.sigmoid(conv(out, model.w5, model.b5))
    out = jnp.transpose(out, (0, 2, 3, 1))  # NCHW -> NHWC
    return out.reshape(x_nchw.shape[0], -1, model.num_classes)


if __name__ == "__main__":
    # Small, forward-consistent shapes; H=W=24 exercises multiple row strips.
    batch = 2
    num_features_in = 4
    feature_size = 32
    num_anchors = 4
    num_classes = 8
    H = W = 24

    key = jax.random.PRNGKey(0)
    k_in, k_params = jax.random.split(key)
    x = jax.random.normal(k_in, (batch, num_features_in, H, W), jnp.float32)

    model = ClassificationModelPallas(
        num_features_in, num_anchors=num_anchors, num_classes=num_classes,
        feature_size=feature_size, key=k_params)

    out = jax.block_until_ready(model(x))
    assert out.shape == (batch, H * W * num_anchors, num_classes), out.shape

    ref = jax.block_until_ready(_reference_forward(model, x))
    max_err = float(jnp.max(jnp.abs(out - ref)))
    assert max_err < 1e-3, max_err

    print("KERNEL_OK")
</pallas_src>

<mosaic_0001>
module attributes {stable_mosaic.version = 11 : i64} {
  func.func @_conv3x3_kernel(%arg0: i32, %arg1: i32, %arg2: i32, %arg3: memref<1x26x26x4xbf16, #tpu.memory_space<vmem>>, %arg4: memref<9x4x128xbf16, #tpu.memory_space<vmem>>, %arg5: memref<1x128xf32, #tpu.memory_space<vmem>>, %arg6: memref<1x192x128xbf16, #tpu.memory_space<vmem>>) attributes {dimension_semantics = [#tpu.dimension_semantics<parallel>, #tpu.dimension_semantics<parallel>, #tpu.dimension_semantics<parallel>], iteration_bounds = array<i64: 2, 1, 3>, scalar_prefetch = 0 : i64, scratch_operands = 0 : i64, tpu.core_type = #tpu.core_type<tc>, window_params = [{transform_indices = @transform_0, window_bounds = array<i64: 1, 26, 26, 4>}, {transform_indices = @transform_1, window_bounds = array<i64: 9, 4, 128>}, {transform_indices = @transform_2, window_bounds = array<i64: 1, 128>}, {transform_indices = @transform_3, window_bounds = array<i64: 1, 192, 128>}]} {
    %c8_i32 = arith.constant 8 : i32
    %0 = arith.muli %arg2, %c8_i32 : i32
    %1 = tpu.assume_multiple %0, 8 : i32
    %cst = arith.constant 0.000000e+00 : f32
    %2 = vector.broadcast %cst : f32 to vector<192x128xf32>
    %c0_i32 = arith.constant 0 : i32
    %3 = arith.addi %1, %c0_i32 : i32
    %c0 = arith.constant 0 : index
    %4 = arith.index_cast %3 : i32 to index
    %c0_0 = arith.constant 0 : index
    %c0_1 = arith.constant 0 : index
    %5 = vector.load %arg3[%c0, %4, %c0_0, %c0_1] : memref<1x26x26x4xbf16, #tpu.memory_space<vmem>>, vector<1x8x24x4xbf16>
    %6 = vector.shape_cast %5 : vector<1x8x24x4xbf16> to vector<8x24x4xbf16>
    %7 = vector.shape_cast %6 : vector<8x24x4xbf16> to vector<192x4xbf16>
    %c0_2 = arith.constant 0 : index
    %c0_3 = arith.constant 0 : index
    %c0_4 = arith.constant 0 : index
    %8 = vector.load %arg4[%c0_2, %c0_3, %c0_4] : memref<9x4x128xbf16, #tpu.memory_space<vmem>>, vector<1x4x128xbf16>
    %9 = vector.shape_cast %8 : vector<1x4x128xbf16> to vector<4x128xbf16>
    %cst_5 = arith.constant dense<0.000000e+00> : vector<192x128xf32>
    %10 = tpu.matmul %7, %9, %cst_5 {dimension_numbers = #tpu.dot_dimension_numbers<[1], [0], [0], [1], [0, 0, 1, 1], [], []>} : vector<192x4xbf16>, vector<4x128xbf16>, vector<192x128xf32> -> vector<192x128xf32>
    %11 = arith.addf %2, %10 : vector<192x128xf32>
    %c0_i32_6 = arith.constant 0 : i32
    %12 = arith.addi %1, %c0_i32_6 : i32
    %c0_7 = arith.constant 0 : index
    %13 = arith.index_cast %12 : i32 to index
    %c1 = arith.constant 1 : index
    %c0_8 = arith.constant 0 : index
    %14 = vector.load %arg3[%c0_7, %13, %c1, %c0_8] : memref<1x26x26x4xbf16, #tpu.memory_space<vmem>>, vector<1x8x24x4xbf16>
    %15 = vector.shape_cast %14 : vector<1x8x24x4xbf16> to vector<8x24x4xbf16>
    %16 = vector.shape_cast %15 : vector<8x24x4xbf16> to vector<192x4xbf16>
    %c1_9 = arith.constant 1 : index
    %c0_10 = arith.constant 0 : index
    %c0_11 = arith.constant 0 : index
    %17 = vector.load %arg4[%c1_9, %c0_10, %c0_11] : memref<9x4x128xbf16, #tpu.memory_space<vmem>>, vector<1x4x128xbf16>
    %18 = vector.shape_cast %17 : vector<1x4x128xbf16> to vector<4x128xbf16>
    %cst_12 = arith.constant dense<0.000000e+00> : vector<192x128xf32>
    %19 = tpu.matmul %16, %18, %cst_12 {dimension_numbers = #tpu.dot_dimension_numbers<[1], [0], [0], [1], [0, 0, 1, 1], [], []>} : vector<192x4xbf16>, vector<4x128xbf16>, vector<192x128xf32> -> vector<192x128xf32>
    %20 = arith.addf %11, %19 : vector<192x128xf32>
    %c0_i32_13 = arith.constant 0 : i32
    %21 = arith.addi %1, %c0_i32_13 : i32
    %c0_14 = arith.constant 0 : index
    %22 = arith.index_cast %21 : i32 to index
    %c2 = arith.constant 2 : index
    %c0_15 = arith.constant 0 : index
    %23 = vector.load %arg3[%c0_14, %22, %c2, %c0_15] : memref<1x26x26x4xbf16, #tpu.memory_space<vmem>>, vector<1x8x24x4xbf16>
    %24 = vector.shape_cast %23 : vector<1x8x24x4xbf16> to vector<8x24x4xbf16>
    %25 = vector.shape_cast %24 : vector<8x24x4xbf16> to vector<192x4xbf16>
    %c2_16 = arith.constant 2 : index
    %c0_17 = arith.constant 0 : index
    %c0_18 = arith.constant 0 : index
    %26 = vector.load %arg4[%c2_16, %c0_17, %c0_18] : memref<9x4x128xbf16, #tpu.memory_space<vmem>>, vector<1x4x128xbf16>
    %27 = vector.shape_cast %26 : vector<1x4x128xbf16> to vector<4x128xbf16>
    %cst_19 = arith.constant dense<0.000000e+00> : vector<192x128xf32>
    %28 = tpu.matmul %25, %27, %cst_19 {dimension_numbers = #tpu.dot_dimension_numbers<[1], [0], [0], [1], [0, 0, 1, 1], [], []>} : vector<192x4xbf16>, vector<4x128xbf16>, vector<192x128xf32> -> vector<192x128xf32>
    %29 = arith.addf %20, %28 : vector<192x128xf32>
    %c1_i32 = arith.constant 1 : i32
    %30 = arith.addi %1, %c1_i32 : i32
    %c0_20 = arith.constant 0 : index
    %31 = arith.index_cast %30 : i32 to index
    %c0_21 = arith.constant 0 : index
    %c0_22 = arith.constant 0 : index
    %32 = vector.load %arg3[%c0_20, %31, %c0_21, %c0_22] : memref<1x26x26x4xbf16, #tpu.memory_space<vmem>>, vector<1x8x24x4xbf16>
    %33 = vector.shape_cast %32 : vector<1x8x24x4xbf16> to vector<8x24x4xbf16>
    %34 = vector.shape_cast %33 : vector<8x24x4xbf16> to vector<192x4xbf16>
    %c3 = arith.constant 3 : index
    %c0_23 = arith.constant 0 : index
    %c0_24 = arith.constant 0 : index
    %35 = vector.load %arg4[%c3, %c0_23, %c0_24] : memref<9x4x128xbf16, #tpu.memory_space<vmem>>, vector<1x4x128xbf16>
    %36 = vector.shape_cast %35 : vector<1x4x128xbf16> to vector<4x128xbf16>
    %cst_25 = arith.constant dense<0.000000e+00> : vector<192x128xf32>
    %37 = tpu.matmul %34, %36, %cst_25 {dimension_numbers = #tpu.dot_dimension_numbers<[1], [0], [0], [1], [0, 0, 1, 1], [], []>} : vector<192x4xbf16>, vector<4x128xbf16>, vector<192x128xf32> -> vector<192x128xf32>
    %38 = arith.addf %29, %37 : vector<192x128xf32>
    %c1_i32_26 = arith.constant 1 : i32
    %39 = arith.addi %1, %c1_i32_26 : i32
    %c0_27 = arith.constant 0 : index
    %40 = arith.index_cast %39 : i32 to index
    %c1_28 = arith.constant 1 : index
    %c0_29 = arith.constant 0 : index
    %41 = vector.load %arg3[%c0_27, %40, %c1_28, %c0_29] : memref<1x26x26x4xbf16, #tpu.memory_space<vmem>>, vector<1x8x24x4xbf16>
    %42 = vector.shape_cast %41 : vector<1x8x24x4xbf16> to vector<8x24x4xbf16>
    %43 = vector.shape_cast %42 : vector<8x24x4xbf16> to vector<192x4xbf16>
    %c4 = arith.constant 4 : index
    %c0_30 = arith.constant 0 : index
    %c0_31 = arith.constant 0 : index
    %44 = vector.load %arg4[%c4, %c0_30, %c0_31] : memref<9x4x128xbf16, #tpu.memory_space<vmem>>, vector<1x4x128xbf16>
    %45 = vector.shape_cast %44 : vector<1x4x128xbf16> to vector<4x128xbf16>
    %cst_32 = arith.constant dense<0.000000e+00> : vector<192x128xf32>
    %46 = tpu.matmul %43, %45, %cst_32 {dimension_numbers = #tpu.dot_dimension_numbers<[1], [0], [0], [1], [0, 0, 1, 1], [], []>} : vector<192x4xbf16>, vector<4x128xbf16>, vector<192x128xf32> -> vector<192x128xf32>
    %47 = arith.addf %38, %46 : vector<192x128xf32>
    %c1_i32_33 = arith.constant 1 : i32
    %48 = arith.addi %1, %c1_i32_33 : i32
    %c0_34 = arith.constant 0 : index
    %49 = arith.index_cast %48 : i32 to index
    %c2_35 = arith.constant 2 : index
    %c0_36 = arith.constant 0 : index
    %50 = vector.load %arg3[%c0_34, %49, %c2_35, %c0_36] : memref<1x26x26x4xbf16, #tpu.memory_space<vmem>>, vector<1x8x24x4xbf16>
    %51 = vector.shape_cast %50 : vector<1x8x24x4xbf16> to vector<8x24x4xbf16>
    %52 = vector.shape_cast %51 : vector<8x24x4xbf16> to vector<192x4xbf16>
    %c5 = arith.constant 5 : index
    %c0_37 = arith.constant 0 : index
    %c0_38 = arith.constant 0 : index
    %53 = vector.load %arg4[%c5, %c0_37, %c0_38] : memref<9x4x128xbf16, #tpu.memory_space<vmem>>, vector<1x4x128xbf16>
    %54 = vector.shape_cast %53 : vector<1x4x128xbf16> to vector<4x128xbf16>
    %cst_39 = arith.constant dense<0.000000e+00> : vector<192x128xf32>
    %55 = tpu.matmul %52, %54, %cst_39 {dimension_numbers = #tpu.dot_dimension_numbers<[1], [0], [0], [1], [0, 0, 1, 1], [], []>} : vector<192x4xbf16>, vector<4x128xbf16>, vector<192x128xf32> -> vector<192x128xf32>
    %56 = arith.addf %47, %55 : vector<192x128xf32>
    %c2_i32 = arith.constant 2 : i32
    %57 = arith.addi %1, %c2_i32 : i32
    %c0_40 = arith.constant 0 : index
    %58 = arith.index_cast %57 : i32 to index
    %c0_41 = arith.constant 0 : index
    %c0_42 = arith.constant 0 : index
    %59 = vector.load %arg3[%c0_40, %58, %c0_41, %c0_42] : memref<1x26x26x4xbf16, #tpu.memory_space<vmem>>, vector<1x8x24x4xbf16>
    %60 = vector.shape_cast %59 : vector<1x8x24x4xbf16> to vector<8x24x4xbf16>
    %61 = vector.shape_cast %60 : vector<8x24x4xbf16> to vector<192x4xbf16>
    %c6 = arith.constant 6 : index
    %c0_43 = arith.constant 0 : index
    %c0_44 = arith.constant 0 : index
    %62 = vector.load %arg4[%c6, %c0_43, %c0_44] : memref<9x4x128xbf16, #tpu.memory_space<vmem>>, vector<1x4x128xbf16>
    %63 = vector.shape_cast %62 : vector<1x4x128xbf16> to vector<4x128xbf16>
    %cst_45 = arith.constant dense<0.000000e+00> : vector<192x128xf32>
    %64 = tpu.matmul %61, %63, %cst_45 {dimension_numbers = #tpu.dot_dimension_numbers<[1], [0], [0], [1], [0, 0, 1, 1], [], []>} : vector<192x4xbf16>, vector<4x128xbf16>, vector<192x128xf32> -> vector<192x128xf32>
    %65 = arith.addf %56, %64 : vector<192x128xf32>
    %c2_i32_46 = arith.constant 2 : i32
    %66 = arith.addi %1, %c2_i32_46 : i32
    %c0_47 = arith.constant 0 : index
    %67 = arith.index_cast %66 : i32 to index
    %c1_48 = arith.constant 1 : index
    %c0_49 = arith.constant 0 : index
    %68 = vector.load %arg3[%c0_47, %67, %c1_48, %c0_49] : memref<1x26x26x4xbf16, #tpu.memory_space<vmem>>, vector<1x8x24x4xbf16>
    %69 = vector.shape_cast %68 : vector<1x8x24x4xbf16> to vector<8x24x4xbf16>
    %70 = vector.shape_cast %69 : vector<8x24x4xbf16> to vector<192x4xbf16>
    %c7 = arith.constant 7 : index
    %c0_50 = arith.constant 0 : index
    %c0_51 = arith.constant 0 : index
    %71 = vector.load %arg4[%c7, %c0_50, %c0_51] : memref<9x4x128xbf16, #tpu.memory_space<vmem>>, vector<1x4x128xbf16>
    %72 = vector.shape_cast %71 : vector<1x4x128xbf16> to vector<4x128xbf16>
    %cst_52 = arith.constant dense<0.000000e+00> : vector<192x128xf32>
    %73 = tpu.matmul %70, %72, %cst_52 {dimension_numbers = #tpu.dot_dimension_numbers<[1], [0], [0], [1], [0, 0, 1, 1], [], []>} : vector<192x4xbf16>, vector<4x128xbf16>, vector<192x128xf32> -> vector<192x128xf32>
    %74 = arith.addf %65, %73 : vector<192x128xf32>
    %c2_i32_53 = arith.constant 2 : i32
    %75 = arith.addi %1, %c2_i32_53 : i32
    %c0_54 = arith.constant 0 : index
    %76 = arith.index_cast %75 : i32 to index
    %c2_55 = arith.constant 2 : index
    %c0_56 = arith.constant 0 : index
    %77 = vector.load %arg3[%c0_54, %76, %c2_55, %c0_56] : memref<1x26x26x4xbf16, #tpu.memory_space<vmem>>, vector<1x8x24x4xbf16>
    %78 = vector.shape_cast %77 : vector<1x8x24x4xbf16> to vector<8x24x4xbf16>
    %79 = vector.shape_cast %78 : vector<8x24x4xbf16> to vector<192x4xbf16>
    %c8 = arith.constant 8 : index
    %c0_57 = arith.constant 0 : index
    %c0_58 = arith.constant 0 : index
    %80 = vector.load %arg4[%c8, %c0_57, %c0_58] : memref<9x4x128xbf16, #tpu.memory_space<vmem>>, vector<1x4x128xbf16>
    %81 = vector.shape_cast %80 : vector<1x4x128xbf16> to vector<4x128xbf16>
    %cst_59 = arith.constant dense<0.000000e+00> : vector<192x128xf32>
    %82 = tpu.matmul %79, %81, %cst_59 {dimension_numbers = #tpu.dot_dimension_numbers<[1], [0], [0], [1], [0, 0, 1, 1], [], []>} : vector<192x4xbf16>, vector<4x128xbf16>, vector<192x128xf32> -> vector<192x128xf32>
    %83 = arith.addf %74, %82 : vector<192x128xf32>
    %c0_60 = arith.constant 0 : index
    %c0_61 = arith.constant 0 : index
    %84 = vector.load %arg5[%c0_60, %c0_61] : memref<1x128xf32, #tpu.memory_space<vmem>>, vector<1x128xf32>
    %85 = vector.broadcast %84 : vector<1x128xf32> to vector<192x128xf32>
    %86 = arith.addf %83, %85 : vector<192x128xf32>
    %cst_62 = arith.constant 0.000000e+00 : f32
    %87 = vector.broadcast %cst_62 : f32 to vector<192x128xf32>
    %88 = arith.maximumf %86, %87 : vector<192x128xf32>
    %89 = arith.truncf %88 : vector<192x128xf32> to vector<192x128xbf16>
    %c0_63 = arith.constant 0 : index
    %c0_64 = arith.constant 0 : index
    %c0_65 = arith.constant 0 : index
    %90 = vector.load %arg6[%c0_63, %c0_64, %c0_65] : memref<1x192x128xbf16, #tpu.memory_space<vmem>>, vector<1x192x128xbf16>
    %91 = vector.shape_cast %90 : vector<1x192x128xbf16> to vector<192x128xbf16>
    %92 = vector.shape_cast %89 : vector<192x128xbf16> to vector<1x192x128xbf16>
    tpu.vector_store %arg6[%c0_63, %c0_64, %c0_65], %92 {strides = array<i32>} : memref<1x192x128xbf16, #tpu.memory_space<vmem>>, vector<1x192x128xbf16>,
    return
  }
  func.func @transform_0(%arg0: i32, %arg1: i32, %arg2: i32) -> (i32, i32, i32, i32) {
    %c0_i32 = arith.constant 0 : i32
    %c0_i32_0 = arith.constant 0 : i32
    %c0_i32_1 = arith.constant 0 : i32
    %c0_i32_2 = arith.constant 0 : i32
    return %arg0, %c0_i32, %c0_i32_0, %c0_i32_1 : i32, i32, i32, i32
  }
  func.func @transform_1(%arg0: i32, %arg1: i32, %arg2: i32) -> (i32, i32, i32) {
    %c0_i32 = arith.constant 0 : i32
    %c0_i32_0 = arith.constant 0 : i32
    %c0_i32_1 = arith.constant 0 : i32
    return %c0_i32, %c0_i32_0, %arg1 : i32, i32, i32
  }
  func.func @transform_2(%arg0: i32, %arg1: i32, %arg2: i32) -> (i32, i32) {
    %c0_i32 = arith.constant 0 : i32
    %c0_i32_0 = arith.constant 0 : i32
    return %c0_i32, %arg1 : i32, i32
  }
  func.func @transform_3(%arg0: i32, %arg1: i32, %arg2: i32) -> (i32, i32, i32) {
    %c0_i32 = arith.constant 0 : i32
    return %arg0, %arg2, %arg1 : i32, i32, i32
  }
}

</mosaic_0001>

<bundles_post_ra>
// kernel: tpu_custom_call.1
= control target key start
LH: loop header
LB: loop body
LE: loop exit
PB: predicated region body
PF: predicated region fallthrough
CT: control target
= control target key end

     0   :  { %8 = vsyncpa [#allocation3], 0  ;;  %s5372_s0 = inlined_call_operand.vmem [shape: bf16[2,26,26,4], index: 0, kind: input, shape index: {}]   ;;  %s5373_s1 = inlined_call_operand.vmem [shape: bf16[9,4,128], index: 1, kind: input, shape index: {}]   ;;  %s5374_s2 = inlined_call_operand.vmem [shape: f32[1,128], index: 2, kind: input, shape index: {}]   ;;  %s5375_s3 = inlined_call_operand.hbm [shape: bf16[2,576,128], index: 3, kind: output, shape index: {}]  }
   0x1   :  { %10 = vsyncpa [#allocation3 + $0x1], 0  ;;  %s4105_s12 = smov 0   ;;  %s4107_s13 = smov 0  }
   0x2   :  { %s4109_s14 = smov 0   ;;  %s4111_s15 = smov 0  }
   0x3   :  { %s4113_s16 = smov 0   ;;  %s4115_s17 = smov 0  }
   0x4   :  { %s4117_s18 = smov 0   ;;  %s4119_s19 = smov 0  }
   0x5 LB: > { %s3338_s20 = sadd.s32 4294967295, %s4081_s19   ;;  %s3339_s21 = sadd.s32 4294967294, %s4081_s19   ;;  %s4081_s19 = sphi %s4119_s19, %s16_s19   ;;  %s4077_s18 = sphi %s4117_s18, %s5388_s18   ;;  %s4073_s17 = sphi %s4115_s17, %s5387_s17   ;;  %s4069_s16 = sphi %s4113_s16, %s5386_s16   ;;  %s4065_s15 = sphi %s4111_s15, %s5385_s15   ;;  %s4061_s14 = sphi %s4109_s14, %s5384_s14   ;;  %s4057_s13 = sphi %s4107_s13, %s5383_s13   ;;  %s4053_s12 = sphi %s4105_s12, %s5382_s12  }
   0x6   : > { %s28_s22 = sadd.s32 1, %s4073_s17  ;;  %s35_s23 = sadd.s32 1, %s4077_s18 }
   0x7   : > { %p29_p0 = scmp.ge.s32.totalorder %s28_s22, 3  ;;  %p134_p1 = scmp.ne.s32.totalorder %s4061_s14, %s4057_s13 }
   0x8   : > { %p135_p2 = scmp.eq.s32.totalorder %s3338_s20, 5  ;;  %p140_p5 = scmp.ne.s32.totalorder %s4057_s13, %s4053_s12 }
   0x9   : > { %s5390_s22 = smov (%p29_p0, %s28_s22), 0  ;;  %s5392_s23 = smov (!%p29_p0, %s35_s23), %s4077_s18 }
   0xa   : > { %s118_s24 = ssub.s32 %s4073_s17, %s5390_s22  ;;  %p4156_p3 = por %p135_p2, %p134_p1 }
   0xb   : > { %p37_p4 = scmp.ge.s32.totalorder %s5392_s23, 2  ;;  %p141_p6 = scmp.eq.s32.totalorder %s3339_s21, 5 }
   0xc   : > { %p3344_p7 = scmp.ge.s32.totalorder %s4081_s19, 1  ;;  %p180_p9 = scmp.lt.s32.totalorder %s4081_s19, 7 }
   0xd   : > { %s5394_s23 = smov (%p37_p4, %s5392_s23), 0  ;;  %p4165_p8 = por %p141_p6, %p140_p5 }
   0xe   : > { %s117_s27 = ssub.s32 %s4077_s18, %s5394_s23  ;;  %s124_s28 = sadd.s32 1, %s4061_s14 }
   0xf   : > { %s119_s29 = sor.u32 %s118_s24, %s117_s27  ;;  %p181_p10 = pnand %p3344_p7, %p180_p9 }
  0x10   : > { %p122_p11 = scmp.eq.s32.totalorder %s119_s29, 0  ;;  %p211_p12 = scmp.lt.s32.totalorder (!%p181_p10), %s4069_s16, 1 }
  0x11   : > { %184 = sbr.rel (%p181_p10) target bundleno = 626 (0x272), region = 32  ;;  %s3769_s10 = sshll.u32 (!%p181_p10), %s4065_s15, 7 }
  0x12   : > { %s4174_s30 = scalar_select %p122_p11, %s4061_s14, %s124_s28  }
  0x13   : > { %s208_s29 = sand.u32 (!%p181_p10), 1, %s4057_s13   ;;  %s3884_s7 = smul.u32 (!%p181_p10), 72, %s4069_s16 }
  0x14   : > { %s5210_s4 = smul.u32 (!%p181_p10), 96, %s208_s29  ;;  %s3203_s21 = scalar_lea.sflag (!%p181_p10), [#allocation3], %s208_s29 }
  0x16   : > { %v3349_v0 = vld [vmem:[%s5373_s1 + $0x2] sm:$0x3]  ;;  %vm612_vm0 = vcmask 1041408   ;;  %s212_s6 = scalar_select %p211_p12, %s4069_s16, 1  ;;  %v3430_v2 = vld [vmem:[%s5373_s1 + $0x4] sm:$0x3] }
  0x17   : > { %v614_v1 = vsel %vm612_vm0, %v3349_v0, 0  ;;  %v1035_v3 = vsel %vm612_vm0, %v3430_v2, 0  ;;  %v3469_v4 = vld [vmem:[%s5373_s1 + $0x6] sm:$0x3]  ;;  %v253_v5 = vld [vmem:[%s5373_s1] sm:$0x3] }
  0x18   : > { %3879 = vmatpush.bf16.msra.mxu1 %v614_v1  ;;  %3880 = vmatpush.bf16.msra.mxu2 %v614_v1  ;;  %s3883_s9 = smul.u32 416, %s212_s6  ;;  %v1257_v6 = vsel %vm612_vm0, %v3469_v4, 0  ;;  %v782_v7 = vsel %vm612_vm0, %v253_v5, 0  ;;  %v3562_v8 = vld [vmem:[%s5373_s1 + $0x8] sm:$0x3]  ;;  %vm575_vm3 = vcmask 31744  }
  0x19   : > { %3881 = vmatpush.bf16.msra.mxu3 %v614_v1  ;;  %623 = vmatpush.bf16.msra.mxu0 %v614_v1  ;;  %v1731_v9 = vsel %vm612_vm0, %v3562_v8, 0  ;;  %vm262_vm1 = vsmask.f32 3328  ;;  %vm263_vm2 = vsmask.f32 7440  ;;  %vm877_vm5 = vcmask 1042432  }
  0x1a   : > { %s215_s5 = scalar_lea.vmem %s5372_s0, %s3883_s9  ;;  %vm4230_vm4 = vmor %vm262_vm1, %vm263_vm2  ;;  %vm878_vm6 = vcmask 1046532  }
  0x1b   : > { %s4202_s6 = scalar_lea.vmem %s215_s5, %s3769_s10  ;;  %vm4410_vm7 = vmor %vm877_vm5, %vm878_vm6  ;;  %s5238_s5 = scalar_lea.vmem [#allocation2], %s5210_s4 }
  0x1c   : > { %1044 = vmatpush.bf16.msrb.mxu2 %v1035_v3  ;;  %791 = vmatpush.bf16.msrb.mxu1 %v782_v7  ;;  %v235_v10 = vld [vmem:[%s4202_s6 + $0x20] sm:$0xf]  ;;  %v4206_v11 = vld [vmem:[%s4202_s6 + $0x24] sm:$0xf]  ;;  %v4209_v12 = vld [vmem:[%s4202_s6 + $0x28] sm:$0xf] }
  0x1d   : > { %1266 = vmatpush.bf16.msrb.mxu3 %v1257_v6  ;;  %1740 = vmatpush.bf16.msrb.mxu0 %v1731_v9  ;;  %v334_v13 = vshrl.u32 %v235_v10, 16  ;;  %v337_v14 = vshll.u32 %v235_v10, 16  ;;  %v343_v15 = vshll.u32 %v4206_v11, 16  ;;  %v347_v16 = vshrl.u32 %v4206_v11, 16  ;;  %v241_v17 = vld [vmem:[%s4202_s6 + $0x40] sm:$0xf] }
  0x1e   : > { %v353_v18 = vshll.u32 %v4209_v12, 16  ;;  %v4216_v19 = vld [vmem:[%s4202_s6 + $0x44] sm:$0xf]  ;;  %v4219_v20 = vld [vmem:[%s4202_s6 + $0x48] sm:$0xf]  ;;  %v402_v21 = vshrl.u32 %v241_v17, 16 }
  0x1f   : > { %v336_v22 = vrot.slane %v334_v13, 4  ;;  %v339_v23 = vrot.slane %v337_v14, 5  ;;  %v345_v24 = vrot.slane %v343_v15, 5  ;;  %v349_v25 = vrot.slane %v347_v16, 4  ;;  %v247_v26 = vld [vmem:[%s4202_s6 + $0x60] sm:$0xf] }
  0x20   : > { %v4222_v27 = vrot.slane %v353_v18, 5  ;;  %v404_v28 = vrot.slane %v402_v21, 4  ;;  %v405_v29 = vshll.u32 %v241_v17, 16  ;;  %v411_v30 = vshll.u32 %v4216_v19, 16  ;;  %v248_v35 = vld [vmem:[%s4202_s6 + $0x64] sm:$0xf] }
  0x21   : > { %v340_v31 = vor.u32 %v339_v23, %v336_v22  ;;  %v350_v32 = vor.u32 %v349_v25, %v345_v24  ;;  %v415_v33 = vshrl.u32 %v4216_v19, 16  ;;  %v421_v34 = vshll.u32 %v4219_v20, 16  ;;  %v4237_v46 = vld [vmem:[%s4202_s6 + $0x68] sm:$0xf]  ;;  %v229_v54 = vld [vmem:[%s4202_s6] sm:$0xf] }
  0x22   : > { %v407_v37 = vrot.slane %v405_v29, 5  ;;  %v413_v38 = vrot.slane %v411_v30, 5  ;;  %v470_v39 = vshrl.u32 %v247_v26, 16  ;;  %v473_v40 = vshll.u32 %v247_v26, 16  ;;  %v4249_v2 = vld [vmem:[%s4202_s6 + $0x4] sm:$0xf] }
  0x23   : > { %v341_v41 = vrot.slane %v340_v31, 4  ;;  %v351_v42 = vrot.slane %v350_v32, 4  ;;  %v417_v43 = vrot.slane %v415_v33, 4  ;;  %v4234_v44 = vrot.slane %v421_v34, 5  ;;  %v4257_v8 = vld [vmem:[%s4202_s6 + $0x8] sm:$0xf] }
  0x24   : > { %v408_v45 = vor.u32 %v407_v37, %v404_v28  ;;  %v472_v47 = vrot.slane %v470_v39, 4  ;;  %v475_v48 = vrot.slane %v473_v40, 5  ;;  %v479_v49 = vshll.u32 %v248_v35, 16  ;;  %v4263_v15 = vld [vmem:[%s4202_s6 + $0x2c] sm:$0x1]  ;;  %s3218_s11 = sshll.u32 %s5238_s5, 4  ;;  %s3219_s11 = int_to_ptr.vmem [resolvable:$true] %s3218_s11 }
  0x25   : > { %v346_v50 = vsel %vm4230_vm4, %v341_v41, %v345_v24  ;;  %v356_v51 = vsel %vm4230_vm4, %v351_v42, %v4222_v27  ;;  %v418_v52 = vor.u32 %v417_v43, %v413_v38  ;;  %v483_v53 = vshrl.u32 %v248_v35, 16  ;;  %v238_v25 = vld [vmem:[%s4202_s6 + $0x30] sm:$0xf]  ;;  %v4274_v31 = vld [vmem:[%s4202_s6 + $0x34] sm:$0xf] }
  0x26   : > { %v545_v55 = vunpack.c.l.b16 %v346_v50  ;;  %v546_v56 = vunpack.c.l.b16 %v356_v51  ;;  %v409_v57 = vrot.slane %v408_v45, 4  ;;  %v476_v58 = vor.u32 %v475_v48, %v472_v47  ;;  %v4281_v42 = vld [vmem:[%s4202_s6 + $0x4c] sm:$0x1] }
  0x27   : > { %v419_v59 = vrot.slane %v418_v52, 4  ;;  %v481_v60 = vrot.slane %v479_v49, 5  ;;  %v485_v61 = vrot.slane %v483_v53, 4  ;;  %v489_v62 = vshll.u32 %v4237_v46, 16  ;;  %v244_v52 = vld [vmem:[%s4202_s6 + $0x50] sm:$0xf] }
  0x28   : > { %v566_v63 = vpack.c.b16 %v546_v56, %v545_v55  ;;  %v414_v0 = vsel %vm4230_vm4, %v409_v57, %v413_v38  ;;  %v477_v1 = vrot.slane %v476_v58, 4  ;;  %v266_v3 = vshrl.u32 %v229_v54, 16 }
  0x29   : > { %v424_v4 = vsel %vm4230_vm4, %v419_v59, %v4234_v44  ;;  %v551_v5 = vunpack.c.l.b16 %v414_v0  ;;  %v486_v6 = vor.u32 %v485_v61, %v481_v60  ;;  %v4254_v7 = vrot.slane %v489_v62, 5 }
  0x2a   : > { %3353 = vmatmul.msk.bf16.vlgmr.msra.gmra.mxu1 %vm575_vm3, %v566_v63  ;;  %v552_v9 = vunpack.c.l.b16 %v424_v4  ;;  %v482_v10 = vsel %vm4230_vm4, %v477_v1, %v481_v60  ;;  %v268_v13 = vrot.slane %v266_v3, 4  ;;  %v269_v14 = vshll.u32 %v229_v54, 16  ;;  %v4297_v60 = vld [vmem:[%s4202_s6 + $0x54] sm:$0xf]  ;;  %v260_v1 = vld [vmem:[%s4202_s6 + $0x6c] sm:$0x1] }
  0x2b   : > { %v487_v16 = vrot.slane %v486_v6, 4  ;;  %v557_v17 = vunpack.c.l.b16 %v482_v10  ;;  %v275_v18 = vshll.u32 %v4249_v2, 16  ;;  %v279_v21 = vshrl.u32 %v4249_v2, 16 }
  0x2c   : > { %v569_v22 = vpack.c.b16 %v552_v9, %v551_v5  ;;  %v271_v23 = vrot.slane %v269_v14, 5  ;;  %v285_v24 = vshll.u32 %v4257_v8, 16  ;;  %v357_v26 = vshrl.u32 %v4209_v12, 16  ;;  %v250_v9 = vld [vmem:[%s4202_s6 + $0x70] sm:$0xf] }
  0x2d   : > { %v492_v28 = vsel %vm4230_vm4, %v487_v16, %v4254_v7  ;;  %v277_v29 = vrot.slane %v275_v18, 5  ;;  %v281_v30 = vrot.slane %v279_v21, 4  ;;  %v363_v32 = vshll.u32 %v4263_v15, 16 }
  0x2e   : > { %3356 = vmatmul.msk.bf16.vlgmr.msra.gmra.mxu2 %vm575_vm3, %v569_v22  ;;  %v558_v33 = vunpack.c.l.b16 %v492_v28  ;;  %v272_v34 = vor.u32 %v271_v23, %v268_v13  ;;  %v4278_v35 = vrot.slane %v285_v24, 5  ;;  %v359_v37 = vrot.slane %v357_v26, 4  ;;  %v4311_v23 = vld [vmem:[%s4202_s6 + $0x74] sm:$0xf] }
  0x2f   : > { %v282_v38 = vor.u32 %v281_v30, %v277_v29  ;;  %v365_v39 = vrot.slane %v363_v32, 5  ;;  %v368_v40 = vshrl.u32 %v238_v25, 16  ;;  %v371_v41 = vshll.u32 %v238_v25, 16  ;;  %v232_v30 = vld [vmem:[%s4202_s6 + $0x10] sm:$0xf] }
  0x30   : > { %v572_v43 = vpack.c.b16 %v558_v33, %v557_v17  ;;  %v273_v45 = vrot.slane %v272_v34, 4  ;;  %v360_v47 = vor.u32 %v359_v37, %v4222_v27  ;;  %v377_v48 = vshll.u32 %v4274_v31, 16  ;;  %v4319_v32 = vld [vmem:[%s4202_s6 + $0xc] sm:$0x1] }
  0x31   : > { %v283_v49 = vrot.slane %v282_v38, 4  ;;  %v370_v50 = vrot.slane %v368_v40, 4  ;;  %v373_v51 = vrot.slane %v371_v41, 5  ;;  %v425_v53 = vshrl.u32 %v4219_v20, 16 }
  0x32   : > { %3359 = vmatmul.msk.bf16.vlgmr.msra.gmra.mxu3 %vm575_vm3, %v572_v43  ;;  %v278_v54 = vsel %vm4230_vm4, %v273_v45, %v277_v29  ;;  %v361_v55 = vrot.slane %v360_v47, 4  ;;  %v4290_v56 = vrot.slane %v377_v48, 5  ;;  %v431_v27 = vshll.u32 %v4281_v42, 16 }
  0x33   : > { %v288_v57 = vsel %vm4230_vm4, %v283_v49, %v4278_v35  ;;  %v539_v58 = vunpack.c.l.b16 %v278_v54  ;;  %v374_v59 = vor.u32 %v373_v51, %v370_v50  ;;  %v427_v20 = vrot.slane %v425_v53, 4 }
  0x34   : > { %v540_v61 = vunpack.c.l.b16 %v288_v57  ;;  %v366_v62 = vsel %vm4230_vm4, %v361_v55, %v365_v39  ;;  %v433_v63 = vrot.slane %v431_v27, 5  ;;  %v436_v0 = vshrl.u32 %v244_v52, 16 }
  0x35   : > { %v375_v3 = vrot.slane %v374_v59, 4  ;;  %v547_v4 = vunpack.c.l.b16 %v366_v62  ;;  %v428_v5 = vor.u32 %v427_v20, %v4234_v44  ;;  %v439_v6 = vshll.u32 %v244_v52, 16  ;;  %v4332_v52 = vld [vmem:[%s4202_s6 + $0x14] sm:$0xf] }
  0x36   : > { %v563_v10 = vpack.c.b16 %v540_v61, %v539_v58  ;;  %v438_v13 = vrot.slane %v436_v0, 4  ;;  %v445_v14 = vshll.u32 %v4297_v60, 16  ;;  %v493_v16 = vshrl.u32 %v4237_v46, 16  ;;  %v4337_v58 = vld [vmem:[%s4202_s6 + $0x38] sm:$0xf] }
  0x37   : > { %v380_v17 = vsel %vm4230_vm4, %v375_v3, %v4290_v56  ;;  %v429_v18 = vrot.slane %v428_v5, 4  ;;  %v441_v21 = vrot.slane %v439_v6, 5  ;;  %v499_v22 = vshll.u32 %v260_v1, 16  ;;  %v4342_v3 = vld [vmem:[%s4202_s6 + $0x3c] sm:$0x1] }
  0x38   : > { %3350 = vmatmul.msk.bf16.vlgmr.msra.gmra.mxu0 %vm575_vm3, %v563_v10  ;;  %v548_v44 = vunpack.c.l.b16 %v380_v17  ;;  %v495_v24 = vrot.slane %v493_v16, 4  ;;  %v504_v25 = vshrl.u32 %v250_v9, 16  ;;  %v4315_v29 = vrot.slane %v445_v14, 5 }
  0x39   : > { %v434_v26 = vsel %vm4230_vm4, %v429_v18, %v433_v63  ;;  %v442_v28 = vor.u32 %v441_v21, %v438_v13  ;;  %v507_v46 = vshll.u32 %v250_v9, 16  ;;  %v501_v37 = vrot.slane %v499_v22, 5 }
  0x3a   : > { %v567_v33 = vpack.c.b16 %v548_v44, %v547_v4  ;;  %v496_v34 = vor.u32 %v495_v24, %v4254_v7  ;;  %v506_v38 = vrot.slane %v504_v25, 4  ;;  %v553_v40 = vunpack.c.l.b16 %v434_v26  ;;  %v4355_v44 = vld [vmem:[%s4202_s6 + $0x58] sm:$0xf] }
  0x3b   : > { %v443_v39 = vrot.slane %v442_v28, 4  ;;  %v509_v41 = vrot.slane %v507_v46, 5  ;;  %v513_v43 = vshll.u32 %v4311_v23, 16  ;;  %v289_v47 = vshrl.u32 %v4257_v8, 16  ;;  %v4361_v28 = vld [vmem:[%s4202_s6 + $0x5c] sm:$0x1] }
  0x3c   : > { %3354 = vmatmul.msk.bf16.gmra.mxu1 %vm575_vm3, %v567_v33  ;;  %v497_v45 = vrot.slane %v496_v34, 4  ;;  %v295_v48 = vshll.u32 %v4319_v32, 16  ;;  %v300_v49 = vshrl.u32 %v232_v30, 16  ;;  %v303_v53 = vshll.u32 %v232_v30, 16 }
  0x3d   : > { %v448_v7 = vsel %vm4230_vm4, %v443_v39, %v4315_v29  ;;  %v510_v50 = vor.u32 %v509_v41, %v506_v38  ;;  %v4329_v51 = vrot.slane %v513_v43, 5  ;;  %v291_v27 = vrot.slane %v289_v47, 4  ;;  %v252_v47 = vld [vmem:[%s4202_s6 + $0x78] sm:$0xf] }
  0x3e   : > { %v554_v54 = vunpack.c.l.b16 %v448_v7  ;;  %v502_v55 = vsel %vm4230_vm4, %v497_v45, %v501_v37  ;;  %v297_v57 = vrot.slane %v295_v48, 5  ;;  %v302_v61 = vrot.slane %v300_v49, 4 }
  0x3f   : > { %v511_v59 = vrot.slane %v510_v50, 4  ;;  %v559_v20 = vunpack.c.l.b16 %v502_v55  ;;  %v305_v62 = vrot.slane %v303_v53, 5  ;;  %v292_v0 = vor.u32 %v291_v27, %v4278_v35 }
  0x40   : > { %v570_v63 = vpack.c.b16 %v554_v54, %v553_v40  ;;  %v309_v1 = vshll.u32 %v4332_v52, 16  ;;  %v381_v4 = vshrl.u32 %v4274_v31, 16  ;;  %v387_v9 = vshll.u32 %v4337_v58, 16  ;;  %v261_v54 = vld [vmem:[%s4202_s6 + $0x7c] sm:$0x1] }
  0x41   : > { %v516_v5 = vsel %vm4230_vm4, %v511_v59, %v4329_v51  ;;  %v306_v6 = vor.u32 %v305_v62, %v302_v61  ;;  %v391_v10 = vshrl.u32 %v4337_v58, 16  ;;  %v293_v13 = vrot.slane %v292_v0, 4 }
  0x42   : > { %3357 = vmatmul.msk.bf16.gmra.mxu2 %vm575_vm3, %v570_v63  ;;  %v560_v35 = vunpack.c.l.b16 %v516_v5  ;;  %v4351_v14 = vrot.slane %v309_v1, 5  ;;  %v383_v16 = vrot.slane %v381_v4, 4  ;;  %v389_v18 = vrot.slane %v387_v9, 5  ;;  %v4381_v4 = vld [vmem:[%s4202_s6 + $0x18] sm:$0xf] }
  0x43   : > { %v307_v17 = vrot.slane %v306_v6, 4  ;;  %v393_v21 = vrot.slane %v391_v10, 4  ;;  %v397_v22 = vshll.u32 %v4342_v3, 16  ;;  %v298_v25 = vsel %vm4230_vm4, %v293_v13, %v297_v57  ;;  %v4387_v10 = vld [vmem:[%s4202_s6 + $0x1c] sm:$0x1] }
  0x44   : > { %v573_v24 = vpack.c.b16 %v560_v35, %v559_v20  ;;  %v384_v26 = vor.u32 %v383_v16, %v4290_v56  ;;  %v449_v46 = vshrl.u32 %v4297_v60, 16  ;;  %v541_v33 = vunpack.c.l.b16 %v298_v25 }
  0x45   : > { %v312_v30 = vsel %vm4230_vm4, %v307_v17, %v4351_v14  ;;  %v394_v34 = vor.u32 %v393_v21, %v389_v18  ;;  %v399_v37 = vrot.slane %v397_v22, 5  ;;  %v455_v41 = vshll.u32 %v4355_v44, 16 }
  0x46   : > { %3360 = vmatmul.msk.bf16.gmra.mxu3 %vm575_vm3, %v573_v24  ;;  %v542_v38 = vunpack.c.l.b16 %v312_v30  ;;  %v385_v39 = vrot.slane %v384_v26, 4  ;;  %v451_v40 = vrot.slane %v449_v46, 4  ;;  %v459_v43 = vshrl.u32 %v4355_v44, 16  ;;  %v853_v46 = vld [vmem:[%s4202_s6] sm:$0xe] }
  0x47   : > { %v395_v56 = vrot.slane %v394_v34, 4  ;;  %v465_v45 = vshll.u32 %v4361_v28, 16  ;;  %v517_v48 = vshrl.u32 %v4311_v23, 16  ;;  %v457_v53 = vrot.slane %v455_v41, 5 }
  0x48   : > { %v564_v49 = vpack.c.b16 %v542_v38, %v541_v33  ;;  %v390_v7 = vsel %vm4230_vm4, %v385_v39, %v389_v18  ;;  %v452_v50 = vor.u32 %v451_v40, %v4315_v29  ;;  %v461_v57 = vrot.slane %v459_v43, 4  ;;  %v3530_v38 = vld [vmem:[%s4202_s6 + $0x10] sm:$0xf]  ;;  %v3630_v43 = vld [vmem:[%s5373_s1 + $0xc] sm:$0x3] }
  0x49   : > { %v400_v55 = vsel %vm4230_vm4, %v395_v56, %v399_v37  ;;  %v549_v27 = vunpack.c.l.b16 %v390_v7  ;;  %v519_v23 = vrot.slane %v517_v48, 4  ;;  %v523_v61 = vshll.u32 %v252_v47, 16 }
  0x4a   : > { %3351 = vmatmul.msk.bf16.gmra.mxu0 %vm575_vm3, %v564_v49  ;;  %v550_v59 = vunpack.c.l.b16 %v400_v55  ;;  %v453_v20 = vrot.slane %v452_v50, 4  ;;  %v462_v62 = vor.u32 %v461_v57, %v457_v53  ;;  %v467_v63 = vrot.slane %v465_v45, 5 }
  0x4b   : > { %v527_v0 = vshrl.u32 %v252_v47, 16  ;;  %v533_v1 = vshll.u32 %v261_v54, 16  ;;  %v520_v6 = vor.u32 %v519_v23, %v4329_v51  ;;  %v525_v9 = vrot.slane %v523_v61, 5  ;;  %v4416_v23 = vld [vmem:[%s4202_s6 + $0x14] sm:$0xf] }
  0x4c   : > { %v568_v29 = vpack.c.b16 %v550_v59, %v549_v27  ;;  %v458_v5 = vsel %vm4230_vm4, %v453_v20, %v457_v53  ;;  %v463_v35 = vrot.slane %v462_v62, 4  ;;  %v313_v21 = vshrl.u32 %v4332_v52, 16  ;;  %v4421_v62 = vld [vmem:[%s4202_s6 + $0x18] sm:$0xf] }
  0x4d   : > { %v555_v13 = vunpack.c.l.b16 %v458_v5  ;;  %v529_v16 = vrot.slane %v527_v0, 4  ;;  %v535_v17 = vrot.slane %v533_v1, 5  ;;  %v521_v18 = vrot.slane %v520_v6, 4 }
  0x4e   : > { %3355 = vmatmul.msk.bf16.gmra.mxu1 %vm575_vm3, %v568_v29  ;;  %v319_v22 = vshll.u32 %v4381_v4, 16  ;;  %v323_v24 = vshrl.u32 %v4381_v4, 16  ;;  %v468_v51 = vsel %vm4230_vm4, %v463_v35, %v467_v63  ;;  %v329_v26 = vshll.u32 %v4387_v10, 16 }
  0x4f   : > { %v530_v25 = vor.u32 %v529_v16, %v525_v9  ;;  %v556_v30 = vunpack.c.l.b16 %v468_v51  ;;  %v526_v33 = vsel %vm4230_vm4, %v521_v18, %v525_v9  ;;  %v315_v34 = vrot.slane %v313_v21, 4  ;;  %v3723_v16 = vld [vmem:[%s5373_s1 + $0xe] sm:$0x3]  ;;  %v3591_v21 = vld [vmem:[%s5373_s1 + $0xa] sm:$0x3]  ;;  %v3770_v51 = vld [vmem:[%s4202_s6] sm:$0xff] }
  0x50   : > { %v321_v37 = vrot.slane %v319_v22, 5  ;;  %v561_v40 = vunpack.c.l.b16 %v526_v33  ;;  %v325_v41 = vrot.slane %v323_v24, 4  ;;  %v331_v56 = vrot.slane %v329_v26, 5  ;;  %v3752_v22 = vld [vmem:[%s5373_s1 + $0x10] sm:$0x3] }
  0x51   : > { %v531_v39 = vrot.slane %v530_v25, 4  ;;  %v571_v45 = vpack.c.b16 %v556_v30, %v555_v13  ;;  %v316_v47 = vor.u32 %v315_v34, %v4351_v14  ;;  %v3422_v48 = vrot.slane %v853_v46, 9 }
  0x52   : > { %v326_v7 = vor.u32 %v325_v41, %v321_v37  ;;  %v882_v50 = vrot.slane %v4249_v2, 5  ;;  %v885_v53 = vrot.slane %v4257_v8, 5  ;;  %v2243_v14 = vsel %vm612_vm0, %v3630_v43, 0 }
  0x53   : > { %v536_v49 = vsel %vm4230_vm4, %v531_v39, %v535_v17  ;;  %3358 = vmatmul.msk.bf16.gmra.mxu2 %vm575_vm3, %v571_v45  ;;  %v317_v55 = vrot.slane %v316_v47, 4  ;;  %v1385_v57 = vshrl.u32 %v3530_v38, 16  ;;  %v1388_v2 = vshll.u32 %v3530_v38, 16 }
  0x54   : > { %v562_v54 = vunpack.c.l.b16 %v536_v49  ;;  %v327_v59 = vrot.slane %v326_v7, 4  ;;  %v884_v20 = vrot.slane %v882_v50, 4  ;;  %2252 = vmatpush.bf16.msra.mxu2 %v2243_v14  ;;  %v883_v29 = vsel %vm4410_vm7, %v3422_v48, %v882_v50  ;;  %v854_v48 = vld [vmem:[%s4202_s6 + $0x10] sm:$0xe] }
  0x55   : > { %v322_v8 = vsel %vm4230_vm4, %v317_v55, %v321_v37  ;;  %v1387_v63 = vrot.slane %v1385_v57, 4  ;;  %v1390_v5 = vrot.slane %v1388_v2, 5  ;;  %v1394_v35 = vshll.u32 %v4416_v23, 16  ;;  %v3783_v55 = vld [vmem:[%s4202_s6 + $0x10] sm:$0xff] }
  0x56   : > { %v574_v61 = vpack.c.b16 %v562_v54, %v561_v40  ;;  %v332_v0 = vsel %vm4230_vm4, %v327_v59, %v331_v56  ;;  %v543_v1 = vunpack.c.l.b16 %v322_v8  ;;  %v886_v9 = vsel %vm4410_vm7, %v884_v20, %v885_v53  ;;  %v3534_v56 = vld [vmem:[%s4202_s6 + $0x20] sm:$0xf] }
  0x57   : > { %v544_v6 = vunpack.c.l.b16 %v332_v0  ;;  %v1398_v13 = vshrl.u32 %v4416_v23, 16  ;;  %v1391_v17 = vor.u32 %v1390_v5, %v1387_v63  ;;  %v1404_v18 = vshll.u32 %v4421_v62, 16  ;;  %v3771_v5 = vld [vmem:[%s4202_s6 + $0xc] sm:$0xf0] }
  0x58   : > { %3361 = vmatmul.msk.bf16.gmra.mxu3 %vm575_vm3, %v574_v61  ;;  %v1396_v25 = vrot.slane %v1394_v35, 5  ;;  %v962_v46 = vunpack.c.l.b16 %v883_v29  ;;  %v963_v30 = vunpack.c.l.b16 %v886_v9  ;;  %v2717_v33 = vsel %vm612_vm0, %v3723_v16, 0  ;;  %v4460_v61 = vld [vmem:[%s4202_s6 + $0x1c] sm:$0x1]  ;;  %v3368_v29 = vld [vmem:[%s4202_s6 + $0x8] sm:$0xf] }
  0x59   : > { %v565_v24 = vpack.c.b16 %v544_v6, %v543_v1  ;;  %v1400_v26 = vrot.slane %v1398_v13, 4  ;;  %v1392_v34 = vrot.slane %v1391_v17, 4  ;;  %2726 = vmatpush.bf16.msra.mxu3 %v2717_v33  ;;  %v2021_v38 = vsel %vm612_vm0, %v3591_v21, 0  ;;  %v3535_v1 = vld [vmem:[%s4202_s6 + $0x24] sm:$0xf] }
  0x5a   : > { %v3007_v39 = vsel %vm612_vm0, %v3752_v22, 0  ;;  %v1406_v40 = vrot.slane %v1404_v18, 5  ;;  %2030 = vmatpush.bf16.msra.mxu1 %v2021_v38  ;;  %v986_v43 = vpack.c.b16 %v963_v30, %v962_v46  ;;  %v1408_v49 = vshrl.u32 %v4421_v62, 16  ;;  %v3536_v21 = vld [vmem:[%s4202_s6 + $0x28] sm:$0xf] }
  0x5b   : > { %3352 = vmatmul.msk.bf16.gmra.mxu0 %vm575_vm3, %v565_v24  ;;  %v1401_v37 = vor.u32 %v1400_v26, %v1396_v25  ;;  %v1397_v45 = vsel %vm4230_vm4, %v1392_v34, %v1396_v25  ;;  %v1419_v7 = vshrl.u32 %v3534_v56, 16  ;;  %v1422_v50 = vshll.u32 %v3534_v56, 16  ;;  %v3476_v26 = vld [vmem:[%s4202_s6 + $0x18] sm:$0xf]  ;;  %v3784_v46 = vld [vmem:[%s4202_s6 + $0x1c] sm:$0xf0] }
  0x5c   : > { %3016 = vmatpush.bf16.msra.mxu0 %v3007_v39  ;;  %v887_v54 = vrot.slane %v885_v53, 4  ;;  %v1658_v14 = vunpack.c.l.b16 %v1397_v45  ;;  %v888_v59 = vrot.slane %v4319_v32, 5  ;;  %v3423_v20 = vrot.slane %v854_v48, 9 }
  0x5d   : > { %v1402_v41 = vrot.slane %v1401_v37, 4  ;;  %v892_v2 = vrot.slane %v4332_v52, 5  ;;  %v1410_v8 = vrot.slane %v1408_v49, 4  ;;  %v1421_v63 = vrot.slane %v1419_v7, 4 }
  0x5e   : > { %3410 = vmatmul.msk.bf16.vlgmr.msrb.gmra.mxu1 %vm575_vm3, %v3770_v51  ;;  %v1424_v0 = vrot.slane %v1422_v50, 5  ;;  %v889_v6 = vsel %vm4410_vm7, %v887_v54, %v888_v59  ;;  %v1414_v32 = vshll.u32 %v4460_v61, 16  ;;  %v1428_v13 = vshll.u32 %v3535_v1, 16 }
  0x5f   : > { %v1407_v47 = vsel %vm4230_vm4, %v1402_v41, %v1406_v40  ;;  %v893_v52 = vsel %vm4410_vm7, %v3423_v20, %v892_v2  ;;  %v1411_v9 = vor.u32 %v1410_v8, %v1406_v40  ;;  %v3369_v16 = vor.u32 %v3771_v5, %v3368_v29  ;;  %v3538_v29 = vld [vmem:[%s4202_s6 + $0x30] sm:$0xf]  ;;  %v3539_v5 = vld [vmem:[%s4202_s6 + $0x34] sm:$0xf] }
  0x60   : > { %v1659_v57 = vunpack.c.l.b16 %v1407_v47  ;;  %v1425_v35 = vor.u32 %v1424_v0, %v1421_v63  ;;  %v964_v17 = vunpack.c.l.b16 %v889_v6  ;;  %v965_v18 = vunpack.c.l.b16 %v893_v52  ;;  %v855_v52 = vld [vmem:[%s4202_s6 + $0x20] sm:$0xe] }
  0x61   : > { %v1412_v22 = vrot.slane %v1411_v9, 4  ;;  %v1416_v24 = vrot.slane %v1414_v32, 5  ;;  %v1430_v25 = vrot.slane %v1428_v13, 5  ;;  %v1432_v30 = vshrl.u32 %v3535_v1, 16 }
  0x62   : > { %v1682_v53 = vpack.c.b16 %v1659_v57, %v1658_v14  ;;  %v1426_v51 = vrot.slane %v1425_v35, 4  ;;  %v1438_v33 = vshll.u32 %v3536_v21, 16  ;;  %v1442_v34 = vshrl.u32 %v3536_v21, 16 }
  0x63   : > { %3431 = vmatmul.msk.bf16.vlgmr.msrb.gmra.mxu2 %vm575_vm3, %v986_v43  ;;  %v987_v37 = vpack.c.b16 %v965_v18, %v964_v17  ;;  %v895_v38 = vrot.slane %v4381_v4, 5  ;;  %v1417_v39 = vsel %vm4230_vm4, %v1412_v22, %v1416_v24  ;;  %v3477_v41 = vor.u32 %v3784_v46, %v3476_v26  ;;  %v3537_v4 = vld [vmem:[%s4202_s6 + $0x2c] sm:$0x1]  ;;  %v3785_v24 = vld [vmem:[%s4202_s6 + $0x24] sm:$0xff] }
  0x64   : > { %v1431_v40 = vsel %vm4230_vm4, %v1426_v51, %v1430_v25  ;;  %v894_v56 = vrot.slane %v892_v2, 4  ;;  %v1434_v43 = vrot.slane %v1432_v30, 4  ;;  %v1440_v45 = vrot.slane %v1438_v33, 5  ;;  %v3772_v2 = vld [vmem:[%s4202_s6 + $0x14] sm:$0xff] }
  0x65   : > { %v1444_v47 = vrot.slane %v1442_v34, 4  ;;  %v1660_v48 = vunpack.c.l.b16 %v1417_v39  ;;  %v1661_v49 = vunpack.c.l.b16 %v1431_v40  ;;  %v897_v7 = vrot.slane %v895_v38, 4  ;;  %v3540_v34 = vld [vmem:[%s4202_s6 + $0x38] sm:$0xf] }
  0x66   : > { %v898_v50 = vrot.slane %v4387_v10, 5  ;;  %v896_v54 = vsel %vm4410_vm7, %v894_v56, %v895_v38  ;;  %v1448_v57 = vshll.u32 %v3537_v4, 16  ;;  %v1453_v9 = vshrl.u32 %v3538_v29, 16  ;;  %v3773_v56 = vld [vmem:[%s4202_s6 + $0x20] sm:$0xff] }
  0x67   : > { %v1445_v14 = vor.u32 %v1444_v47, %v1440_v45  ;;  %v1683_v59 = vpack.c.b16 %v1661_v49, %v1660_v48  ;;  %v966_v8 = vunpack.c.l.b16 %v896_v54  ;;  %v1456_v35 = vshll.u32 %v3538_v29, 16  ;;  %v3542_v49 = vld [vmem:[%s4202_s6 + $0x40] sm:$0xf]  ;;  %v856_v54 = vld [vmem:[%s4202_s6 + $0x30] sm:$0xe] }
  0x68   : > { %3518 = vmatmul.msk.bf16.vlgmr.msrb.gmra.mxu3 %vm575_vm3, %v3783_v55  ;;  %v1435_v55 = vor.u32 %v1434_v43, %v1430_v25  ;;  %v899_v20 = vsel %vm4410_vm7, %v897_v7, %v898_v50  ;;  %v1450_v1 = vrot.slane %v1448_v57, 5  ;;  %v1462_v13 = vshll.u32 %v3539_v5, 16 }
  0x69   : > { %v967_v63 = vunpack.c.l.b16 %v899_v20  ;;  %v1446_v0 = vrot.slane %v1445_v14, 4  ;;  %v902_v17 = vrot.slane %v4206_v11, 5  ;;  %v3424_v22 = vrot.slane %v855_v52, 9  ;;  %v3774_v52 = vld [vmem:[%s4202_s6 + $0x2c] sm:$0xf0] }
  0x6a   : > { %v1436_v10 = vrot.slane %v1435_v55, 4  ;;  %v1455_v51 = vrot.slane %v1453_v9, 4  ;;  %v1458_v25 = vrot.slane %v1456_v35, 5  ;;  %v1464_v26 = vrot.slane %v1462_v13, 5 }
  0x6b   : > { %3563 = vmatmul.msk.bf16.vlgmr.msrb.gmra.mxu0 %vm575_vm3, %v1682_v53  ;;  %v988_v53 = vpack.c.b16 %v967_v63, %v966_v8  ;;  %v1451_v32 = vsel %vm4230_vm4, %v1446_v0, %v1450_v1  ;;  %v904_v30 = vrot.slane %v902_v17, 4  ;;  %v905_v33 = vrot.slane %v4209_v12, 5 }
  0x6c   : > { %v1441_v6 = vsel %vm4230_vm4, %v1436_v10, %v1440_v45  ;;  %v1663_v21 = vunpack.c.l.b16 %v1451_v32  ;;  %v903_v11 = vsel %vm4410_vm7, %v3424_v22, %v902_v17  ;;  %v1459_v38 = vor.u32 %v1458_v25, %v1455_v51  ;;  %v3380_v32 = vld [vmem:[%s4202_s6 + $0x28] sm:$0xf] }
  0x6d   : > { %v1662_v18 = vunpack.c.l.b16 %v1441_v6  ;;  %v1472_v40 = vshll.u32 %v3540_v34, 16  ;;  %v968_v43 = vunpack.c.l.b16 %v903_v11  ;;  %v1476_v55 = vshrl.u32 %v3540_v34, 16  ;;  %v3543_v6 = vld [vmem:[%s4202_s6 + $0x44] sm:$0xf]  ;;  %v3787_v34 = vld [vmem:[%s4202_s6 + $0x3c] sm:$0xf0] }
  0x6e   : > { %3411 = vmatmul.msk.bf16.gmra.mxu1 %vm575_vm3, %v3369_v16  ;;  %v1466_v16 = vshrl.u32 %v3539_v5, 16  ;;  %v1460_v45 = vrot.slane %v1459_v38, 4  ;;  %v1487_v14 = vshrl.u32 %v3542_v49, 16  ;;  %v1490_v57 = vshll.u32 %v3542_v49, 16 }
  0x6f   : > { %v1474_v48 = vrot.slane %v1472_v40, 5  ;;  %v907_v8 = vrot.slane %v905_v33, 4  ;;  %v908_v63 = vrot.slane %v4263_v15, 5  ;;  %v3425_v10 = vrot.slane %v856_v54, 9 }
  0x70   : > { %v1468_v46 = vrot.slane %v1466_v16, 4  ;;  %v1465_v50 = vsel %vm4230_vm4, %v1460_v45, %v1464_v26  ;;  %v912_v0 = vrot.slane %v4274_v31, 5  ;;  %v1478_v1 = vrot.slane %v1476_v55, 4 }
  0x71   : > { %v1489_v29 = vrot.slane %v1487_v14, 4  ;;  %v1492_v5 = vrot.slane %v1490_v57, 5  ;;  %v909_v35 = vsel %vm4410_vm7, %v907_v8, %v908_v63  ;;  %v1496_v17 = vshll.u32 %v3543_v6, 16  ;;  %v3546_v63 = vld [vmem:[%s4202_s6 + $0x50] sm:$0xf] }
  0x72   : > { %v1469_v39 = vor.u32 %v1468_v46, %v1464_v26  ;;  %v913_v15 = vsel %vm4410_vm7, %v3425_v10, %v912_v0  ;;  %v1479_v13 = vor.u32 %v1478_v1, %v1474_v48  ;;  %v3544_v46 = vld [vmem:[%s4202_s6 + $0x48] sm:$0xf]  ;;  %v915_v40 = vrot.slane %v4337_v58, 5 }
  0x73   : > { %3432 = vmatmul.msk.bf16.gmra.mxu2 %vm575_vm3, %v987_v37  ;;  %v1684_v37 = vpack.c.b16 %v1663_v21, %v1662_v18  ;;  %v1493_v16 = vor.u32 %v1492_v5, %v1489_v29  ;;  %v3381_v18 = vor.u32 %v3774_v52, %v3380_v32  ;;  %v970_v21 = vunpack.c.l.b16 %v909_v35  ;;  %v3547_v29 = vld [vmem:[%s4202_s6 + $0x54] sm:$0xf] }
  0x74   : > { %v1470_v47 = vrot.slane %v1469_v39, 4  ;;  %v971_v22 = vunpack.c.l.b16 %v913_v15  ;;  %v1498_v26 = vrot.slane %v1496_v17, 5  ;;  %v1506_v11 = vshll.u32 %v3544_v46, 16 }
  0x75   : > { %v1494_v25 = vrot.slane %v1493_v16, 4  ;;  %v917_v49 = vrot.slane %v915_v40, 4  ;;  %v1530_v52 = vshll.u32 %v3547_v29, 16  ;;  %v857_v16 = vld [vmem:[%s4202_s6 + $0x40] sm:$0xe] }
  0x76   : > { %v1475_v4 = vsel %vm4230_vm4, %v1470_v47, %v1474_v48  ;;  %v1508_v47 = vrot.slane %v1506_v11, 5  ;;  %v914_v48 = vrot.slane %v912_v0, 4 }
  0x77   : > { %v1665_v20 = vunpack.c.l.b16 %v1475_v4  ;;  %v1499_v39 = vsel %vm4230_vm4, %v1494_v25, %v1498_v26  ;;  %v3545_v4 = vld [vmem:[%s4202_s6 + $0x4c] sm:$0x1] }
  0x78   : > { %3519 = vmatmul.msk.bf16.gmra.mxu3 %vm575_vm3, %v3477_v41  ;;  %v906_v41 = vsel %vm4410_vm7, %v904_v30, %v905_v33  ;;  %v990_v30 = vpack.c.b16 %v971_v22, %v970_v21  ;;  %v3488_v33 = vld [vmem:[%s4202_s6 + $0x38] sm:$0xf]  ;;  %v916_v14 = vsel %vm4410_vm7, %v914_v48, %v915_v40  ;;  %v3788_v21 = vld [vmem:[%s4202_s6 + $0x44] sm:$0xff] }
  0x79   : > { %v969_v12 = vunpack.c.l.b16 %v906_v41  ;;  %v1510_v41 = vshrl.u32 %v3544_v46, 16  ;;  %v3426_v46 = vrot.slane %v857_v16, 9  ;;  %v3551_v16 = vld [vmem:[%s4202_s6 + $0x64] sm:$0xf] }
  0x7b   : > { %3564 = vmatmul.msk.bf16.gmra.mxu0 %vm575_vm3, %v1683_v59  ;;  %v989_v7 = vpack.c.b16 %v969_v12, %v968_v43  ;;  %v1664_v59 = vunpack.c.l.b16 %v1465_v50  ;;  %v1667_v12 = vunpack.c.l.b16 %v1499_v39  ;;  %v1512_v50 = vrot.slane %v1510_v41, 4 }
  0x7d   : > { %v1685_v9 = vpack.c.b16 %v1665_v20, %v1664_v59  ;;  %v1513_v59 = vor.u32 %v1512_v50, %v1508_v47  ;;  %v1516_v20 = vshll.u32 %v3545_v4, 16 }
  0x7e   : > { %3412 = vmatmul.msk.bf16.gmra.mxu1 %vm575_vm3, %v3772_v2  ;;  %v3786_v2 = vld [vmem:[%s4202_s6 + $0x30] sm:$0xff] }
  0x7f   : > { %v1514_v0 = vrot.slane %v1513_v59, 4  ;;  %v1518_v1 = vrot.slane %v1516_v20, 5 }
  0x81   : > { %v1519_v35 = vsel %vm4230_vm4, %v1514_v0, %v1518_v1  ;;  %v3789_v0 = vld [vmem:[%s4202_s6 + $0x50] sm:$0xff] }
  0x83   : > { %3433 = vmatmul.msk.bf16.gmra.mxu2 %vm575_vm3, %v988_v53  ;;  %v3541_v53 = vld [vmem:[%s4202_s6 + $0x3c] sm:$0x1] }
  0x84   : > { %v1482_v31 = vshll.u32 %v3541_v53, 16  ;;  %v1521_v53 = vshrl.u32 %v3546_v63, 16 }
  0x86   : > { %v1484_v51 = vrot.slane %v1482_v31, 5  ;;  %v1534_v31 = vshrl.u32 %v3547_v29, 16  ;;  %v1523_v17 = vrot.slane %v1521_v53, 4 }
  0x88   : > { %3520 = vmatmul.msk.bf16.gmra.mxu3 %vm575_vm3, %v3785_v24  ;;  %v1480_v24 = vrot.slane %v1479_v13, 4  ;;  %v922_v13 = vrot.slane %v4216_v19, 5 }
  0x8a   : > { %v1485_v38 = vsel %vm4230_vm4, %v1480_v24, %v1484_v51  ;;  %v1669_v24 = vunpack.c.l.b16 %v1519_v35  ;;  %v1532_v51 = vrot.slane %v1530_v52, 5  ;;  %v923_v40 = vsel %vm4410_vm7, %v3426_v46, %v922_v13 }
  0x8b   : > { %3565 = vmatmul.msk.bf16.gmra.mxu0 %vm575_vm3, %v1684_v37  ;;  %v1500_v37 = vshrl.u32 %v3543_v6, 16  ;;  %v1666_v43 = vunpack.c.l.b16 %v1485_v38  ;;  %v1524_v6 = vshll.u32 %v3546_v63, 16  ;;  %v974_v48 = vunpack.c.l.b16 %v923_v40  ;;  %v858_v63 = vld [vmem:[%s4202_s6 + $0x50] sm:$0xe] }
  0x8c   : > { %v3427_v35 = vrot.slane %v858_v63, 9 }
  0x8d   : > { %v1502_v45 = vrot.slane %v1500_v37, 4  ;;  %v1686_v58 = vpack.c.b16 %v1667_v12, %v1666_v43  ;;  %v3548_v37 = vld [vmem:[%s4202_s6 + $0x58] sm:$0xf]  ;;  %v3776_v12 = vld [vmem:[%s4202_s6 + $0x40] sm:$0xff] }
  0x8e   : > { %3413 = vmatmul.msk.bf16.gmra.mxu1 %vm575_vm3, %v3773_v56  ;;  %v3489_v56 = vor.u32 %v3787_v34, %v3488_v33  ;;  %v3959_v33 = vld [vmem:[%s4202_s6 + $0x48] sm:$0xf]  ;;  %v1536_v34 = vrot.slane %v1534_v31, 4  ;;  %v1540_v43 = vshll.u32 %v3548_v37, 16  ;;  %v1544_v59 = vshrl.u32 %v3548_v37, 16 }
  0x8f   : > { %v1503_v55 = vor.u32 %v1502_v45, %v1498_v26  ;;  %v925_v19 = vrot.slane %v3959_v33, 5  ;;  %v3549_v31 = vld [vmem:[%s4202_s6 + $0x5c] sm:$0x1]  ;;  %v1564_v33 = vshll.u32 %v3551_v16, 16 }
  0x90   : > { %v1542_v4 = vrot.slane %v1540_v43, 5  ;;  %v1546_v29 = vrot.slane %v1544_v59, 4 }
  0x91   : > { %v1504_v10 = vrot.slane %v1503_v55, 4  ;;  %v927_v52 = vrot.slane %v925_v19, 4  ;;  %v1566_v43 = vrot.slane %v1564_v33, 5 }
  0x93   : > { %3434 = vmatmul.msk.bf16.gmra.mxu2 %vm575_vm3, %v989_v7  ;;  %v918_v7 = vrot.slane %v4342_v3, 5  ;;  %v972_v3 = vunpack.c.l.b16 %v916_v14 }
  0x95   : > { %v919_v57 = vsel %vm4410_vm7, %v917_v49, %v918_v7 }
  0x96   : > { %v973_v8 = vunpack.c.l.b16 %v919_v57 }
  0x98   : > { %3521 = vmatmul.msk.bf16.gmra.mxu3 %vm575_vm3, %v3786_v2  ;;  %v3775_v2 = vld [vmem:[%s4202_s6 + $0x34] sm:$0xff]  ;;  %v991_v32 = vpack.c.b16 %v973_v8, %v972_v3 }
  0x9b   : > { %3566 = vmatmul.msk.bf16.gmra.mxu0 %vm575_vm3, %v1685_v9  ;;  %v1509_v9 = vsel %vm4230_vm4, %v1504_v10, %v1508_v47 }
  0x9c   : > { %v1668_v22 = vunpack.c.l.b16 %v1509_v9  ;;  %v928_v9 = vrot.slane %v4281_v42, 5 }
  0x9e   : > { %3414 = vmatmul.msk.bf16.gmra.mxu1 %vm575_vm3, %v3381_v18  ;;  %v1526_v18 = vrot.slane %v1524_v6, 5  ;;  %v1687_v38 = vpack.c.b16 %v1669_v24, %v1668_v22  ;;  %v1547_v24 = vor.u32 %v1546_v29, %v1542_v4  ;;  %v929_v42 = vsel %vm4410_vm7, %v927_v52, %v928_v9 }
  0x9f   : > { %v976_v37 = vunpack.c.l.b16 %v929_v42  ;;  %v938_v52 = vrot.slane %v4361_v28, 5  ;;  %v3778_v28 = vld [vmem:[%s4202_s6 + $0x54] sm:$0xff] }
  0xa0   : > { %v1527_v11 = vor.u32 %v1526_v18, %v1523_v17  ;;  %v3392_v18 = vld [vmem:[%s4202_s6 + $0x48] sm:$0xf]  ;;  %v1548_v40 = vrot.slane %v1547_v24, 4 }
  0xa2   : > { %v1528_v47 = vrot.slane %v1527_v11, 4 }
  0xa3   : > { %3435 = vmatmul.msk.bf16.gmra.mxu2 %vm575_vm3, %v990_v30  ;;  %v924_v30 = vrot.slane %v922_v13, 4  ;;  %v932_v13 = vrot.slane %v4297_v60, 5 }
  0xa4   : > { %v1533_v14 = vsel %vm4230_vm4, %v1528_v47, %v1532_v51 }
  0xa5   : > { %v926_v41 = vsel %vm4410_vm7, %v924_v30, %v925_v19  ;;  %v1670_v10 = vunpack.c.l.b16 %v1533_v14  ;;  %v933_v60 = vsel %vm4410_vm7, %v3427_v35, %v932_v13  ;;  %v3553_v35 = vld [vmem:[%s4202_s6 + $0x6c] sm:$0x1] }
  0xa6   : > { %v975_v49 = vunpack.c.l.b16 %v926_v41  ;;  %v977_v11 = vunpack.c.l.b16 %v933_v60  ;;  %v1584_v24 = vshll.u32 %v3553_v35, 16  ;;  %v3554_v60 = vld [vmem:[%s4202_s6 + $0x70] sm:$0xf]  ;;  %v3556_v35 = vld [vmem:[%s4202_s6 + $0x78] sm:$0xf] }
  0xa7   : > { %v4544_v54 = vpop.f32.mrf.mxu1 }
  0xa8   : > { %3522 = vmatmul.msk.bf16.gmra.mxu3 %vm575_vm3, %v3489_v56  ;;  %v1537_v56 = vor.u32 %v1536_v34, %v1532_v51  ;;  %v992_v57 = vpack.c.b16 %v975_v49, %v974_v48  ;;  %v1550_v51 = vshll.u32 %v3549_v31, 16  ;;  %v993_v48 = vpack.c.b16 %v977_v11, %v976_v37  ;;  %v3500_v49 = vld [vmem:[%s4202_s6 + $0x58] sm:$0xf]  ;;  %v3555_v37 = vld [vmem:[%s4202_s6 + $0x74] sm:$0xf] }
  0xaa   : > { %v1538_v50 = vrot.slane %v1537_v56, 4  ;;  %v1552_v41 = vrot.slane %v1550_v51, 5 }
  0xab   : > { %3567 = vmatmul.msk.bf16.gmra.mxu0 %vm575_vm3, %v1686_v58  ;;  %v3550_v58 = vld [vmem:[%s4202_s6 + $0x60] sm:$0xf] }
  0xac   : > { %v1555_v20 = vshrl.u32 %v3550_v58, 16  ;;  %v1543_v3 = vsel %vm4230_vm4, %v1538_v50, %v1542_v4  ;;  %v3790_v50 = vld [vmem:[%s4202_s6 + $0x5c] sm:$0xf0]  ;;  %v1568_v4 = vshrl.u32 %v3551_v16, 16 }
  0xad   : > { %v1671_v1 = vunpack.c.l.b16 %v1543_v3  ;;  %v3501_v3 = vor.u32 %v3790_v50, %v3500_v49  ;;  %v1602_v49 = vshrl.u32 %v3555_v37, 16 }
  0xae   : > { %3415 = vmatmul.msk.bf16.gmra.mxu1 %vm575_vm3, %v3775_v2  ;;  %v1558_v2 = vshll.u32 %v3550_v58, 16  ;;  %v1557_v53 = vrot.slane %v1555_v20, 4  ;;  %v935_v20 = vrot.slane %v4355_v44, 5 }
  0xaf   : > { %v4556_v5 = vpop.f32.mrf.mxu1  ;;  %v1688_v22 = vpack.c.b16 %v1671_v1, %v1670_v10  ;;  %v1570_v1 = vrot.slane %v1568_v4, 4 }
  0xb0   : > { %v1560_v6 = vrot.slane %v1558_v2, 5 }
  0xb1   : > { %v4562_v15 = vpop.f32.mrf.mxu2  ;;  %v1571_v16 = vor.u32 %v1570_v1, %v1566_v43 }
  0xb2   : > { %v1561_v30 = vor.u32 %v1560_v6, %v1557_v53  ;;  %v934_v53 = vrot.slane %v932_v13, 4  ;;  %v937_v6 = vrot.slane %v935_v20, 4 }
  0xb3   : > { %3436 = vmatmul.msk.bf16.gmra.mxu2 %vm575_vm3, %v991_v32  ;;  %v1572_v11 = vrot.slane %v1571_v16, 4 }
  0xb4   : > { %v1562_v56 = vrot.slane %v1561_v30, 4  ;;  %v939_v13 = vsel %vm4410_vm7, %v937_v6, %v938_v52  ;;  %v3791_v6 = vld [vmem:[%s4202_s6 + $0x64] sm:$0xff] }
  0xb5   : > { %v4568_v25 = vpop.f32.mrf.mxu0  ;;  %v4570_v26 = vpop.f32.mrf.mxu3 }
  0xb6   : > { %v1567_v59 = vsel %vm4230_vm4, %v1562_v56, %v1566_v43  ;;  %v1589_v56 = vshrl.u32 %v3554_v60, 16  ;;  %v1592_v43 = vshll.u32 %v3554_v60, 16 }
  0xb8   : > { %3523 = vmatmul.msk.bf16.gmra.mxu3 %vm575_vm3, %v3788_v21  ;;  %v3777_v21 = vld [vmem:[%s4202_s6 + $0x4c] sm:$0xf0] }
  0xb9   : > { %v4575_v39 = vpop.f32.mrf.mxu1  ;;  %v4582_v45 = vpop.f32.mrf.mxu2  ;;  %v3393_v19 = vor.u32 %v3777_v21, %v3392_v18  ;;  %v936_v21 = vsel %vm4410_vm7, %v934_v53, %v935_v20  ;;  %v859_v20 = vld [vmem:[%s4202_s6 + $0x60] sm:$0xe]  ;;  %v1604_v53 = vrot.slane %v1602_v49, 4 }
  0xba   : > { %v978_v33 = vunpack.c.l.b16 %v936_v21  ;;  %v3961_v21 = vld [vmem:[%s4202_s6 + $0x68] sm:$0xf] }
  0xbb   : > { %3568 = vmatmul.msk.bf16.gmra.mxu0 %vm575_vm3, %v1687_v38 }
  0xbd   : > { %v4585_v7 = vpop.f32.mrf.mxu0  ;;  %v4589_v55 = vpop.f32.mrf.mxu3 }
  0xbe   : > { %3416 = vmatmul.msk.bf16.gmra.mxu1 %vm575_vm3, %v3776_v12  ;;  %v3552_v12 = vld [vmem:[%s4202_s6 + $0x68] sm:$0xf] }
  0xbf   : > { %v1574_v58 = vshll.u32 %v3552_v12, 16  ;;  %v1578_v2 = vshrl.u32 %v3552_v12, 16 }
  0xc1   : > { %v4595_v8 = vpop.f32.mrf.mxu1  ;;  %v1576_v29 = vrot.slane %v1574_v58, 5  ;;  %v1580_v9 = vrot.slane %v1578_v2, 4  ;;  %v1591_v2 = vrot.slane %v1589_v56, 4 }
  0xc3   : > { %3437 = vmatmul.msk.bf16.gmra.mxu2 %vm575_vm3, %v992_v57  ;;  %v1553_v57 = vsel %vm4230_vm4, %v1548_v40, %v1552_v41  ;;  %v1586_v41 = vrot.slane %v1584_v24, 5 }
  0xc4   : > { %v1672_v10 = vunpack.c.l.b16 %v1553_v57  ;;  %v3960_v57 = vld [vmem:[%s4202_s6 + $0x64] sm:$0xf] }
  0xc5   : > { %v4600_v32 = vpop.f32.mrf.mxu2 }
  0xc7   : > { %v4606_v17 = vpop.f32.mrf.mxu0 }
  0xc8   : > { %3524 = vmatmul.msk.bf16.gmra.mxu3 %vm575_vm3, %v3789_v0  ;;  %v1673_v0 = vunpack.c.l.b16 %v1567_v59  ;;  %v942_v59 = vrot.slane %v3960_v57, 5 }
  0xc9   : > { %v4611_v46 = vpop.f32.mrf.mxu3 }
  0xca   : > { %v1689_v44 = vpack.c.b16 %v1673_v0, %v1672_v10  ;;  %v944_v16 = vrot.slane %v942_v59, 4 }
  0xcb   : > { %v4617_v34 = vpop.f32.mrf.mxu1  ;;  %3569 = vmatmul.msk.bf16.gmra.mxu0 %vm575_vm3, %v1688_v22  ;;  %v1581_v22 = vor.u32 %v1580_v9, %v1576_v29 }
  0xcd   : > { %v4620_v38 = vpop.f32.mrf.mxu2  ;;  %v1582_v40 = vrot.slane %v1581_v22, 4 }
  0xce   : > { %3417 = vmatmul.msk.bf16.gmra.mxu1 %vm575_vm3, %v3393_v19  ;;  %v979_v19 = vunpack.c.l.b16 %v939_v13  ;;  %v945_v13 = vrot.slane %v3961_v21, 5 }
  0xcf   : > { %v4624_v47 = vpop.f32.mrf.mxu0  ;;  %v1587_v58 = vsel %vm4230_vm4, %v1582_v40, %v1586_v41 }
  0xd0   : > { %v994_v50 = vpack.c.b16 %v979_v19, %v978_v33 }
  0xd1   : > { %v4628_v14 = vpop.f32.mrf.mxu3 }
  0xd3   : > { %v4635_v63 = vpop.f32.mrf.mxu1  ;;  %3438 = vmatmul.msk.bf16.gmra.mxu2 %vm575_vm3, %v993_v48  ;;  %v1598_v48 = vshll.u32 %v3555_v37, 16 }
  0xd5   : > { %v1600_v1 = vrot.slane %v1598_v48, 5 }
  0xd6   : > { %v4640_v31 = vpop.f32.mrf.mxu2 }
  0xd8   : > { %3525 = vmatmul.msk.bf16.gmra.mxu3 %vm575_vm3, %v3501_v3  ;;  %v4643_v18 = vpop.f32.mrf.mxu0  ;;  %v1594_v3 = vrot.slane %v1592_v43, 5 }
  0xda   : > { %v1595_v22 = vor.u32 %v1594_v3, %v1591_v2  ;;  %v1612_v3 = vshrl.u32 %v3556_v35, 16 }
  0xdb   : > { %v4650_v51 = vpop.f32.mrf.mxu3  ;;  %v793_v42 = vpop.f32.mrf.mxu1  ;;  %3570 = vmatmul.msk.bf16.gmra.mxu0 %vm575_vm3, %v1689_v44  ;;  %v3428_v44 = vrot.slane %v859_v20, 9 }
  0xdc   : > { %v794_v30 = vadd.f32 %v793_v42, %v4568_v25  ;;  %v1577_v25 = vsel %vm4230_vm4, %v1572_v11, %v1576_v29  ;;  %v1675_v29 = vunpack.c.l.b16 %v1587_v58  ;;  %v1608_v42 = vshll.u32 %v3556_v35, 16  ;;  %v3779_v11 = vld [vmem:[%s4202_s6 + $0x60] sm:$0xff] }
  0xdd   : > { %v1674_v52 = vunpack.c.l.b16 %v1577_v25  ;;  %v943_v37 = vsel %vm4410_vm7, %v3428_v44, %v942_v59  ;;  %v1596_v40 = vrot.slane %v1595_v22, 4  ;;  %v3558_v58 = vld [vmem:[%s4202_s6 + $0x80] sm:$0xf]  ;;  %v3962_v44 = vld [vmem:[%s4202_s6 + $0x6c] sm:$0x1] }
  0xde   : > { %3418 = vmatmul.msk.bf16.gmra.mxu1 %vm575_vm3, %v3778_v28  ;;  %v4657_v12 = vpop.f32.mrf.mxu2  ;;  %v1605_v28 = vor.u32 %v1604_v53, %v1600_v1  ;;  %v1610_v48 = vrot.slane %v1608_v42, 5  ;;  %v1626_v53 = vshll.u32 %v3558_v58, 16  ;;  %v1614_v42 = vrot.slane %v1612_v3, 4 }
  0xdf   : > { %v1690_v60 = vpack.c.b16 %v1675_v29, %v1674_v52  ;;  %v1601_v57 = vsel %vm4230_vm4, %v1596_v40, %v1600_v1  ;;  %v860_v29 = vld [vmem:[%s4202_s6 + $0x70] sm:$0xe]  ;;  %v3557_v40 = vld [vmem:[%s4202_s6 + $0x7c] sm:$0x1] }
  0xe0   : > { %v4659_v4 = vpop.f32.mrf.mxu0  ;;  %v1606_v43 = vrot.slane %v1605_v28, 4  ;;  %v1676_v21 = vunpack.c.l.b16 %v1601_v57  ;;  %v947_v28 = vrot.slane %v945_v13, 4 }
  0xe2   : > { %v1611_v2 = vsel %vm4230_vm4, %v1606_v43, %v1610_v48 }
  0xe3   : > { %v4667_v10 = vpop.f32.mrf.mxu3  ;;  %v795_v0 = vpop.f32.mrf.mxu1  ;;  %3439 = vmatmul.msk.bf16.gmra.mxu2 %vm575_vm3, %v994_v50  ;;  %v1677_v1 = vunpack.c.l.b16 %v1611_v2 }
  0xe4   : > { %v796_v9 = vadd.f32 %v795_v0, %v4585_v7  ;;  %v946_v7 = vsel %vm4410_vm7, %v944_v16, %v945_v13  ;;  %v1623_v0 = vshrl.u32 %v3558_v58, 16  ;;  %v948_v16 = vrot.slane %v3962_v44, 5 }
  0xe5   : > { %v981_v25 = vunpack.c.l.b16 %v946_v7  ;;  %v4696_v7 = vld [vmem:[%s4202_s6 + $0x74] sm:$0xf]  ;;  %v1691_v13 = vpack.c.b16 %v1677_v1, %v1676_v21  ;;  %v1618_v58 = vshll.u32 %v3557_v40, 16 }
  0xe6   : > { %v1046_v24 = vpop.f32.mrf.mxu2  ;;  %v1625_v35 = vrot.slane %v1623_v0, 4 }
  0xe7   : > { %v1106_v33 = vadd.f32 %v1046_v24, %v794_v30  ;;  %v980_v30 = vunpack.c.l.b16 %v943_v37  ;;  %v3429_v37 = vrot.slane %v860_v29, 9  ;;  %v1620_v44 = vrot.slane %v1618_v58, 5  ;;  %v3965_v58 = vld [vmem:[%s4202_s6 + $0x7c] sm:$0x1] }
  0xe8   : > { %3526 = vmatmul.msk.bf16.gmra.mxu3 %vm575_vm3, %v3791_v6  ;;  %v1742_v19 = vpop.f32.mrf.mxu0 }
  0xeb   : > { %v1268_v41 = vpop.f32.mrf.mxu3  ;;  %v798_v56 = vpop.f32.mrf.mxu1  ;;  %3571 = vmatmul.msk.bf16.gmra.mxu0 %vm575_vm3, %v1690_v60  ;;  %v1628_v60 = vrot.slane %v1626_v53, 5 }
  0xec   : > { %v1328_v49 = vadd.f32 %v1268_v41, %v1106_v33  ;;  %v799_v50 = vadd.f32 %v798_v56, %v4606_v17  ;;  %v995_v17 = vpack.c.b16 %v981_v25, %v980_v30  ;;  %v3792_v33 = vld [vmem:[%s4202_s6 + $0x70] sm:$0xff]  ;;  %v3559_v41 = vld [vmem:[%s4202_s6 + $0x84] sm:$0xf]  ;;  %v1615_v25 = vor.u32 %v1614_v42, %v1610_v48 }
  0xed   : > { %v3780_v30 = vld [vmem:[%s4202_s6 + $0x6c] sm:$0xf0]  ;;  %v1629_v57 = vor.u32 %v1628_v60, %v1625_v35  ;;  %v1632_v3 = vshll.u32 %v3559_v41, 16  ;;  %v3512_v60 = vld [vmem:[%s4202_s6 + $0x78] sm:$0xf] }
  0xee   : > { %3419 = vmatmul.msk.bf16.gmra.mxu1 %vm575_vm3, %v3779_v11  ;;  %v4686_v59 = vadd.f32 %v1742_v19, %v1328_v49  ;;  %v1048_v20 = vpop.f32.mrf.mxu2  ;;  %v952_v11 = vrot.slane %v4696_v7, 5  ;;  %v3404_v49 = vld [vmem:[%s4202_s6 + $0x68] sm:$0xf]  ;;  %v1616_v29 = vrot.slane %v1615_v25, 4 }
  0xef   : > { %v1107_v6 = vadd.f32 %v1048_v20, %v796_v9  ;;  %v3405_v53 = vor.u32 %v3780_v30, %v3404_v49  ;;  %v1630_v21 = vrot.slane %v1629_v57, 4  ;;  %v4712_v1 = vrot.slane %v1632_v3, 5  ;;  %v3964_v30 = vld [vmem:[%s4202_s6 + $0x78] sm:$0xf] }
  0xf0   : > { %v1744_v52 = vpop.f32.mrf.mxu0  ;;  %v953_v2 = vsel %vm4410_vm7, %v3429_v37, %v952_v11  ;;  %v955_v25 = vrot.slane %v3964_v30, 5  ;;  %v958_v57 = vrot.slane %v3965_v58, 5  ;;  %v3781_v30 = vld [vmem:[%s4202_s6 + $0x74] sm:$0xff] }
  0xf1   : > { %v983_v48 = vunpack.c.l.b16 %v953_v2 }
  0xf3   : > { %v1270_v22 = vpop.f32.mrf.mxu3  ;;  %v800_v24 = vpop.f32.mrf.mxu1  ;;  %3440 = vmatmul.msk.bf16.gmra.mxu2 %vm575_vm3, %v995_v17 }
  0xf4   : > { %v1329_v9 = vadd.f32 %v1270_v22, %v1107_v6  ;;  %v801_v19 = vadd.f32 %v800_v24, %v4624_v47  ;;  %v949_v47 = vsel %vm4410_vm7, %v947_v28, %v948_v16  ;;  %v1868_v22 = vrot.slane %v4416_v23, 5  ;;  %v3560_v24 = vld [vmem:[%s4202_s6 + $0x88] sm:$0xf] }
  0xf5   : > { %v1635_v23 = vsel %vm4230_vm4, %v1630_v21, %v4712_v1  ;;  %v1642_v7 = vshll.u32 %v3560_v24, 16  ;;  %v1646_v40 = vshrl.u32 %v3560_v24, 16  ;;  %v3561_v24 = vld [vmem:[%s4202_s6 + $0x8c] sm:$0x1] }
  0xf6   : > { %v4701_v56 = vadd.f32 %v1744_v52, %v1329_v9  ;;  %v1051_v43 = vpop.f32.mrf.mxu2  ;;  %v982_v52 = vunpack.c.l.b16 %v949_v47  ;;  %v3793_v9 = vld [vmem:[%s4202_s6 + $0x7c] sm:$0xf0]  ;;  %v3575_v47 = vld [vmem:[%s4202_s6 + $0x10] sm:$0xe] }
  0xf7   : > { %v1108_v20 = vadd.f32 %v1051_v43, %v799_v50  ;;  %v1871_v43 = vrot.slane %v4421_v62, 5 }
  0xf8   : > { %3527 = vmatmul.msk.bf16.gmra.mxu3 %vm575_vm3, %v3792_v33  ;;  %v1747_v0 = vpop.f32.mrf.mxu0  ;;  %v996_v35 = vpack.c.b16 %v983_v48, %v982_v52  ;;  %v1636_v33 = vshrl.u32 %v3559_v41, 16  ;;  %v1644_v52 = vrot.slane %v1642_v7, 5  ;;  %v1648_v48 = vrot.slane %v1646_v40, 4 }
  0xfb   : > { %v1273_v6 = vpop.f32.mrf.mxu3  ;;  %v803_v17 = vpop.f32.mrf.mxu1  ;;  %3572 = vmatmul.msk.bf16.gmra.mxu0 %vm575_vm3, %v1691_v13  ;;  %v1870_v13 = vrot.slane %v1868_v22, 4 }
  0xfc   : > { %v1330_v50 = vadd.f32 %v1273_v6, %v1108_v20  ;;  %v804_v16 = vadd.f32 %v803_v17, %v4643_v18  ;;  %v1621_v18 = vsel %vm4230_vm4, %v1616_v29, %v1620_v44  ;;  %v3513_v20 = vor.u32 %v3793_v9, %v3512_v60  ;;  %v3691_v9 = vld [vmem:[%s4202_s6 + $0x20] sm:$0xf] }
  0xfd   : > { %v1678_v41 = vunpack.c.l.b16 %v1621_v18  ;;  %v954_v29 = vrot.slane %v952_v11, 4  ;;  %v957_v44 = vrot.slane %v955_v25, 4  ;;  %v1872_v21 = vsel %vm4410_vm7, %v1870_v13, %v1871_v43 }
  0xfe   : > { %3420 = vmatmul.msk.bf16.gmra.mxu1 %vm575_vm3, %v3405_v53  ;;  %v4717_v28 = vadd.f32 %v1747_v0, %v1330_v50  ;;  %v1053_v42 = vpop.f32.mrf.mxu2  ;;  %v1638_v0 = vrot.slane %v1636_v33, 4  ;;  %v3583_v53 = vrot.slane %v3575_v47, 9  ;;  %v1949_v60 = vunpack.c.l.b16 %v1872_v21 }
  0xff   : > { %v1109_v37 = vadd.f32 %v1053_v42, %v801_v19  ;;  %v1679_v19 = vunpack.c.l.b16 %v1635_v23  ;;  %v956_v7 = vsel %vm4410_vm7, %v954_v29, %v955_v25  ;;  %v959_v40 = vsel %vm4410_vm7, %v957_v44, %v958_v57 }
 0x100   : > { %v1749_v49 = vpop.f32.mrf.mxu0  ;;  %v1869_v50 = vsel %vm4410_vm7, %v3583_v53, %v1868_v22  ;;  %v1639_v33 = vor.u32 %v1638_v0, %v4712_v1  ;;  %v1649_v13 = vor.u32 %v1648_v48, %v1644_v52  ;;  %v2371_v58 = vshrl.u32 %v3691_v9, 16 }
 0x101   : > { %v1948_v42 = vunpack.c.l.b16 %v1869_v50  ;;  %v1692_v11 = vpack.c.b16 %v1679_v19, %v1678_v41  ;;  %v984_v19 = vunpack.c.l.b16 %v956_v7  ;;  %v985_v25 = vunpack.c.l.b16 %v959_v40 }
 0x102   : > { %v1650_v0 = vrot.slane %v1649_v13, 4  ;;  %v2373_v53 = vrot.slane %v2371_v58, 4 }
 0x103   : > { %v1275_v2 = vpop.f32.mrf.mxu3  ;;  %v805_v3 = vpop.f32.mrf.mxu1  ;;  %3441 = vmatmul.msk.bf16.gmra.mxu2 %vm575_vm3, %v996_v35  ;;  %v4744_v22 = vpack.c.b16 %v1949_v60, %v1948_v42  ;;  %v4761_v42 = vld [vmem:[%s4202_s6 + $0x28] sm:$0xf]  ;;  %v1874_v60 = vrot.slane %v4460_v61, 5 }
 0x104   : > { %v1331_v6 = vadd.f32 %v1275_v2, %v1109_v37  ;;  %v806_v17 = vadd.f32 %v805_v3, %v4659_v4  ;;  %v4747_v37 = vld [vmem:[%s4202_s6 + $0x24] sm:$0xf]  ;;  %v1640_v3 = vrot.slane %v1639_v33, 4  ;;  %v2390_v40 = vshll.u32 %v4761_v42, 16 }
 0x105   : > { %v2380_v1 = vshll.u32 %v4747_v37, 16  ;;  %v2384_v2 = vshrl.u32 %v4747_v37, 16  ;;  %v3794_v61 = vld [vmem:[%s4202_s6 + $0x84] sm:$0xff]  ;;  %v2854_v62 = vrot.slane %v4747_v37, 5 }
 0x106   : > { %v1056_v35 = vpop.f32.mrf.mxu2  ;;  %v4740_v4 = vadd.f32 %v1749_v49, %v1331_v6  ;;  %v1652_v49 = vshll.u32 %v3561_v24, 16  ;;  %v997_v24 = vpack.c.b16 %v985_v25, %v984_v19  ;;  %v3736_v19 = vld [vmem:[%s4202_s6 + $0x20] sm:$0xe] }
 0x107   : > { %v1110_v18 = vadd.f32 %v1056_v35, %v804_v16  ;;  %v2382_v44 = vrot.slane %v2380_v1, 5  ;;  %v2386_v50 = vrot.slane %v2384_v2, 4  ;;  %v2392_v2 = vrot.slane %v2390_v40, 5  ;;  %v4800_v40 = vld [vmem:[%s4202_s6 + $0x24] sm:$0xf] }
 0x108   : > { %3528 = vmatmul.msk.bf16.gmra.mxu3 %vm575_vm3, %v3513_v20  ;;  %v1752_v23 = vpop.f32.mrf.mxu0  ;;  %v2374_v20 = vshll.u32 %v3691_v9, 16  ;;  %v1654_v57 = vrot.slane %v1652_v49, 5  ;;  %v1645_v9 = vsel %vm4230_vm4, %v1640_v3, %v1644_v52  ;;  %v3695_v3 = vld [vmem:[%s4202_s6 + $0x30] sm:$0xf]  ;;  %v2856_v37 = vrot.slane %v2854_v62, 4 }
 0x109   : > { %v2387_v7 = vor.u32 %v2386_v50, %v2382_v44  ;;  %v1680_v49 = vunpack.c.l.b16 %v1645_v9 }
 0x10a   : > { %v2376_v6 = vrot.slane %v2374_v20, 5 }
 0x10b   : > { %v1278_v47 = vpop.f32.mrf.mxu3  ;;  %v808_v16 = vpop.f32.mrf.mxu1  ;;  %3573 = vmatmul.msk.bf16.gmra.mxu0 %vm575_vm3, %v1692_v11  ;;  %v1655_v11 = vsel %vm4230_vm4, %v1650_v0, %v1654_v57  ;;  %v2388_v1 = vrot.slane %v2387_v7, 4 }
 0x10c   : > { %v1332_v41 = vadd.f32 %v1278_v47, %v1110_v18  ;;  %v2377_v18 = vor.u32 %v2376_v6, %v2373_v53  ;;  %v1681_v52 = vunpack.c.l.b16 %v1655_v11  ;;  %v809_v58 = vadd.f32 %v808_v16, %v4544_v54 }
 0x10d   : > { %v2393_v53 = vsel %vm4230_vm4, %v2388_v1, %v2392_v2  ;;  %v3744_v6 = vrot.slane %v3736_v19, 9 }
 0x10e   : > { %3421 = vmatmul.msk.bf16.gmra.mxu1 %vm575_vm3, %v3781_v30  ;;  %v4758_v48 = vadd.f32 %v1752_v23, %v1332_v41  ;;  %v1058_v29 = vpop.f32.mrf.mxu2  ;;  %v2378_v20 = vrot.slane %v2377_v18, 4  ;;  %v2645_v11 = vunpack.c.l.b16 %v2393_v53 }
 0x10f   : > { %v1111_v21 = vadd.f32 %v1058_v29, %v806_v17  ;;  %v1873_v17 = vrot.slane %v1871_v43, 4  ;;  %v1693_v43 = vpack.c.b16 %v1681_v52, %v1680_v49  ;;  %v2394_v29 = vshrl.u32 %v4761_v42, 16 }
 0x110   : > { %v1754_v35 = vpop.f32.mrf.mxu0  ;;  %v2383_v57 = vsel %vm4230_vm4, %v2378_v20, %v2382_v44  ;;  %v2408_v44 = vshll.u32 %v3695_v3, 16  ;;  %v2855_v7 = vsel %vm4410_vm7, %v3744_v6, %v2854_v62  ;;  %v4810_v20 = vld [vmem:[%s4202_s6 + $0x34] sm:$0xf] }
 0x111   : > { %v4775_v30 = vsel %vm4410_vm7, %v1873_v17, %v1874_v60  ;;  %v2405_v60 = vshrl.u32 %v3695_v3, 16  ;;  %v2644_v9 = vunpack.c.l.b16 %v2383_v57  ;;  %v1878_v17 = vrot.slane %v4800_v40, 5 }
 0x112   : > { %v2410_v52 = vrot.slane %v2408_v44, 5  ;;  %v2414_v53 = vshll.u32 %v4810_v20, 16 }
 0x113   : > { %v1280_v33 = vpop.f32.mrf.mxu3  ;;  %v810_v23 = vpop.f32.mrf.mxu1  ;;  %3442 = vmatmul.msk.bf16.gmra.mxu2 %vm575_vm3, %v997_v24  ;;  %v3576_v24 = vld [vmem:[%s4202_s6 + $0x20] sm:$0xe]  ;;  %v2407_v49 = vrot.slane %v2405_v60, 4  ;;  %v2668_v57 = vpack.c.b16 %v2645_v11, %v2644_v9 }
 0x114   : > { %v1333_v13 = vadd.f32 %v1280_v33, %v1111_v21  ;;  %v2857_v21 = vrot.slane %v4761_v42, 5  ;;  %v3584_v42 = vrot.slane %v3576_v24, 9  ;;  %v2416_v11 = vrot.slane %v2414_v53, 5 }
 0x116   : > { %v1061_v47 = vpop.f32.mrf.mxu2  ;;  %v4782_v0 = vadd.f32 %v1754_v35, %v1333_v13  ;;  %v811_v35 = vadd.f32 %v810_v23, %v4556_v5  ;;  %v2396_v13 = vrot.slane %v2394_v29, 4  ;;  %v3796_v5 = vld [vmem:[%s4202_s6 + $0x20] sm:$0xff]  ;;  %v4807_v23 = vld [vmem:[%s4202_s6 + $0x2c] sm:$0x1] }
 0x117   : > { %v1112_v41 = vadd.f32 %v1061_v47, %v809_v58  ;;  %v2934_v47 = vunpack.c.l.b16 %v2855_v7 }
 0x118   : > { %3529 = vmatmul.msk.bf16.gmra.mxu3 %vm575_vm3, %v3794_v61  ;;  %v1757_v25 = vpop.f32.mrf.mxu0  ;;  %v2397_v19 = vor.u32 %v2396_v13, %v2392_v2 }
 0x11a   : > { %v2398_v2 = vrot.slane %v2397_v19, 4 }
 0x11b   : > { %v1283_v54 = vpop.f32.mrf.mxu3  ;;  %v813_v16 = vpop.f32.mrf.mxu1  ;;  %3574 = vmatmul.msk.bf16.gmra.mxu0 %vm575_vm3, %v1693_v43 }
 0x11c   : > { %v1334_v50 = vadd.f32 %v1283_v54, %v1112_v41  ;;  %v1879_v41 = vsel %vm4410_vm7, %v3584_v42, %v1878_v17  ;;  %v2411_v54 = vor.u32 %v2410_v52, %v2407_v49  ;;  %v814_v6 = vadd.f32 %v813_v16, %v4575_v39  ;;  %v3737_v39 = vld [vmem:[%s4202_s6 + $0x30] sm:$0xe]  ;;  %v3967_v52 = vld [vmem:[%s4202_s6 + $0x28] sm:$0xf] }
 0x11d   : > { %v1951_v29 = vunpack.c.l.b16 %v1879_v41  ;;  %v2859_v49 = vrot.slane %v2857_v21, 4  ;;  %v2860_v41 = vrot.slane %v4807_v23, 5  ;;  %v3745_v19 = vrot.slane %v3737_v39, 9 }
 0x11e   : > { %3592 = vmatmul.msk.bf16.vlgmr.msra.gmra.mxu1 %vm575_vm3, %v4744_v22  ;;  %v4795_v18 = vadd.f32 %v1757_v25, %v1334_v50  ;;  %v1063_v33 = vpop.f32.mrf.mxu2  ;;  %v2858_v22 = vsel %vm4410_vm7, %v2856_v37, %v2857_v21  ;;  %v2400_v25 = vshll.u32 %v4807_v23, 16  ;;  %v1950_v37 = vunpack.c.l.b16 %v4775_v30  ;;  %v4822_v50 = vld [vmem:[%s4202_s6 + $0x38] sm:$0xf] }
 0x11f   : > { %v1113_v61 = vadd.f32 %v1063_v33, %v811_v35  ;;  %v2935_v62 = vunpack.c.l.b16 %v2858_v22  ;;  %v2412_v9 = vrot.slane %v2411_v54, 4  ;;  %v2418_v30 = vshrl.u32 %v4810_v20, 16 }
 0x120   : > { %v1759_v58 = vpop.f32.mrf.mxu0  ;;  %v2402_v44 = vrot.slane %v2400_v25, 5  ;;  %v2424_v16 = vshll.u32 %v4822_v50, 16  ;;  %v2428_v42 = vshrl.u32 %v4822_v50, 16  ;;  %v1973_v13 = vpack.c.b16 %v1951_v29, %v1950_v37  ;;  %v3797_v25 = vld [vmem:[%s4202_s6 + $0x2c] sm:$0xf0] }
 0x121   : > { %v2958_v24 = vpack.c.b16 %v2935_v62, %v2934_v47  ;;  %v2417_v62 = vsel %vm4230_vm4, %v2412_v9, %v2416_v11  ;;  %v3968_v37 = vld [vmem:[%s4202_s6 + $0x2c] sm:$0x1] }
 0x122   : > { %v2403_v22 = vsel %vm4230_vm4, %v2398_v2, %v2402_v44  ;;  %v2426_v54 = vrot.slane %v2424_v16, 5  ;;  %v2430_v21 = vrot.slane %v2428_v42, 4  ;;  %v1884_v29 = vrot.slane %v3968_v37, 5  ;;  %v4849_v2 = vld [vmem:[%s4202_s6 + $0x3c] sm:$0x1] }
 0x123   : > { %v1285_v1 = vpop.f32.mrf.mxu3  ;;  %v815_v43 = vpop.f32.mrf.mxu1  ;;  %3679 = vmatmul.msk.bf16.vlgmr.msra.gmra.mxu2 %vm575_vm3, %v3796_v5  ;;  %v2647_v9 = vunpack.c.l.b16 %v2417_v62  ;;  %v2434_v16 = vshll.u32 %v4849_v2, 16 }
 0x124   : > { %v1335_v3 = vadd.f32 %v1285_v1, %v1113_v61  ;;  %v3637_v1 = vld [vmem:[%s4202_s6 + $0x28] sm:$0xf]  ;;  %v816_v53 = vadd.f32 %v815_v43, %v4595_v8  ;;  %v2861_v8 = vsel %vm4410_vm7, %v2859_v49, %v2860_v41 }
 0x125   : > { %v2936_v49 = vunpack.c.l.b16 %v2861_v8 }
 0x126   : > { %v1066_v60 = vpop.f32.mrf.mxu2  ;;  %v4825_v33 = vadd.f32 %v1759_v58, %v1335_v3  ;;  %v1881_v58 = vrot.slane %v3967_v52, 5  ;;  %v2864_v3 = vrot.slane %v4810_v20, 5  ;;  %v3638_v20 = vor.u32 %v3797_v25, %v3637_v1 }
 0x127   : > { %v1114_v35 = vadd.f32 %v1066_v60, %v814_v6  ;;  %v1880_v60 = vrot.slane %v1878_v17, 4 }
 0x128   : > { %3724 = vmatmul.msk.bf16.vlgmr.msra.gmra.mxu3 %vm575_vm3, %v2668_v57  ;;  %v1762_v7 = vpop.f32.mrf.mxu0  ;;  %v2420_v57 = vrot.slane %v2418_v30, 4  ;;  %v1883_v23 = vrot.slane %v1881_v58, 4  ;;  %v2865_v43 = vsel %vm4410_vm7, %v3745_v19, %v2864_v3  ;;  %v2431_v30 = vor.u32 %v2430_v21, %v2426_v54 }
 0x129   : > { %v1882_v42 = vsel %vm4410_vm7, %v1880_v60, %v1881_v58  ;;  %v2937_v52 = vunpack.c.l.b16 %v2865_v43  ;;  %v2436_v19 = vrot.slane %v2434_v16, 5  ;;  %v3699_v58 = vld [vmem:[%s4202_s6 + $0x40] sm:$0xf] }
 0x12a   : > { %v1952_v62 = vunpack.c.l.b16 %v1882_v42  ;;  %v2442_v8 = vshll.u32 %v3699_v58, 16 }
 0x12b   : > { %v1288_v61 = vpop.f32.mrf.mxu3  ;;  %v818_v5 = vpop.f32.mrf.mxu1  ;;  %3753 = vmatmul.msk.bf16.vlgmr.msra.gmra.mxu0 %vm575_vm3, %v2958_v24  ;;  %v2959_v21 = vpack.c.b16 %v2937_v52, %v2936_v49 }
 0x12c   : > { %v1336_v47 = vadd.f32 %v1288_v61, %v1114_v35  ;;  %v2646_v35 = vunpack.c.l.b16 %v2403_v22  ;;  %v819_v1 = vadd.f32 %v818_v5, %v4617_v34  ;;  %v4870_v34 = vld [vmem:[%s4202_s6 + $0x44] sm:$0xf] }
 0x12e   : > { %3593 = vmatmul.msk.bf16.gmra.mxu1 %vm575_vm3, %v1973_v13  ;;  %v4843_v6 = vadd.f32 %v1762_v7, %v1336_v47  ;;  %v1068_v24 = vpop.f32.mrf.mxu2  ;;  %v2421_v7 = vor.u32 %v2420_v57, %v2416_v11  ;;  %v1885_v13 = vsel %vm4410_vm7, %v1883_v23, %v1884_v29  ;;  %v2669_v22 = vpack.c.b16 %v2647_v9, %v2646_v35  ;;  %v3969_v9 = vld [vmem:[%s4202_s6 + $0x34] sm:$0xf] }
 0x12f   : > { %v1115_v44 = vadd.f32 %v1068_v24, %v816_v53  ;;  %v2432_v47 = vrot.slane %v2431_v30, 4  ;;  %v1953_v41 = vunpack.c.l.b16 %v1885_v13  ;;  %v2867_v24 = vrot.slane %v4822_v50, 5 }
 0x130   : > { %v1764_v39 = vpop.f32.mrf.mxu0  ;;  %v2422_v11 = vrot.slane %v2421_v7, 4  ;;  %v2866_v23 = vrot.slane %v2864_v3, 4  ;;  %v2448_v50 = vshll.u32 %v4870_v34, 16  ;;  %v2452_v7 = vshrl.u32 %v4870_v34, 16 }
 0x131   : > { %v1974_v5 = vpack.c.b16 %v1953_v41, %v1952_v62  ;;  %v2437_v60 = vsel %vm4230_vm4, %v2432_v47, %v2436_v19  ;;  %v2870_v3 = vrot.slane %v4849_v2, 5  ;;  %v3970_v47 = vld [vmem:[%s4202_s6 + $0x38] sm:$0xf]  ;;  %v2444_v62 = vrot.slane %v2442_v8, 5 }
 0x132   : > { %v2427_v29 = vsel %vm4230_vm4, %v2422_v11, %v2426_v54  ;;  %v3577_v54 = vld [vmem:[%s4202_s6 + $0x30] sm:$0xe]  ;;  %v2649_v16 = vunpack.c.l.b16 %v2437_v60  ;;  %v2868_v13 = vsel %vm4410_vm7, %v2866_v23, %v2867_v24  ;;  %v3798_v19 = vld [vmem:[%s4202_s6 + $0x34] sm:$0xff]  ;;  %v2450_v2 = vrot.slane %v2448_v50, 5 }
 0x133   : > { %v1290_v40 = vpop.f32.mrf.mxu3  ;;  %v820_v17 = vpop.f32.mrf.mxu1  ;;  %3680 = vmatmul.msk.bf16.gmra.mxu2 %vm575_vm3, %v3638_v20  ;;  %v2648_v30 = vunpack.c.l.b16 %v2427_v29  ;;  %v3585_v52 = vrot.slane %v3577_v54, 9 }
 0x134   : > { %v1337_v61 = vadd.f32 %v1290_v40, %v1115_v44  ;;  %v2439_v44 = vshrl.u32 %v3699_v58, 16  ;;  %v2869_v40 = vrot.slane %v2867_v24, 4  ;;  %v821_v42 = vadd.f32 %v820_v17, %v4635_v63  ;;  %v4891_v58 = vld [vmem:[%s4202_s6 + $0x48] sm:$0xf] }
 0x136   : > { %v1071_v25 = vpop.f32.mrf.mxu2  ;;  %v4863_v57 = vadd.f32 %v1764_v39, %v1337_v61  ;;  %v1888_v39 = vrot.slane %v3969_v9, 5  ;;  %v2441_v61 = vrot.slane %v2439_v44, 4  ;;  %v2871_v17 = vsel %vm4410_vm7, %v2869_v40, %v2870_v3 }
 0x137   : > { %v1116_v53 = vadd.f32 %v1071_v25, %v819_v1  ;;  %v1891_v1 = vrot.slane %v3970_v47, 5  ;;  %v2454_v25 = vrot.slane %v2452_v7, 4  ;;  %v2939_v44 = vunpack.c.l.b16 %v2871_v17 }
 0x138   : > { %3725 = vmatmul.msk.bf16.gmra.mxu3 %vm575_vm3, %v2669_v22  ;;  %v1767_v37 = vpop.f32.mrf.mxu0  ;;  %v1890_v11 = vrot.slane %v1888_v39, 4  ;;  %v1889_v24 = vsel %vm4410_vm7, %v3585_v52, %v1888_v39  ;;  %v2445_v60 = vor.u32 %v2444_v62, %v2441_v61  ;;  %v2458_v9 = vshll.u32 %v4891_v58, 16 }
 0x13a   : > { %v2446_v7 = vrot.slane %v2445_v60, 4  ;;  %v4901_v40 = vrot.slane %v2458_v9, 5  ;;  %v1893_v60 = vrot.slane %v1891_v1, 4 }
 0x13b   : > { %v1293_v20 = vpop.f32.mrf.mxu3  ;;  %v823_v35 = vpop.f32.mrf.mxu1  ;;  %3754 = vmatmul.msk.bf16.gmra.mxu0 %vm575_vm3, %v2959_v21  ;;  %v2938_v21 = vunpack.c.l.b16 %v2868_v13  ;;  %v2874_v13 = vrot.slane %v4870_v34, 5  ;;  %v2877_v34 = vrot.slane %v4891_v58, 5 }
 0x13c   : > { %v1338_v43 = vadd.f32 %v1293_v20, %v1116_v53  ;;  %v2455_v20 = vor.u32 %v2454_v25, %v2450_v2  ;;  %v824_v8 = vadd.f32 %v823_v35, %v4562_v15  ;;  %v3703_v15 = vld [vmem:[%s4202_s6 + $0x50] sm:$0xf] }
 0x13d   : > { %v2960_v39 = vpack.c.b16 %v2939_v44, %v2938_v21  ;;  %v2876_v25 = vrot.slane %v2874_v13, 4  ;;  %v2473_v17 = vshrl.u32 %v3703_v15, 16  ;;  %v2476_v21 = vshll.u32 %v3703_v15, 16  ;;  %v4923_v44 = vld [vmem:[%s4202_s6 + $0x44] sm:$0xf] }
 0x13e   : > { %3594 = vmatmul.msk.bf16.gmra.mxu1 %vm575_vm3, %v1974_v5  ;;  %v4884_v22 = vadd.f32 %v1767_v37, %v1338_v43  ;;  %v1073_v49 = vpop.f32.mrf.mxu2  ;;  %v2670_v37 = vpack.c.b16 %v2649_v16, %v2648_v30  ;;  %v1892_v5 = vsel %vm4410_vm7, %v1890_v11, %v1891_v1  ;;  %v1954_v43 = vunpack.c.l.b16 %v1889_v24 }
 0x13f   : > { %v1117_v41 = vadd.f32 %v1073_v49, %v821_v42  ;;  %v1955_v54 = vunpack.c.l.b16 %v1892_v5  ;;  %v2456_v16 = vrot.slane %v2455_v20, 4  ;;  %v3738_v42 = vld [vmem:[%s4202_s6 + $0x40] sm:$0xe]  ;;  %v2451_v11 = vsel %vm4230_vm4, %v2446_v7, %v2450_v2 }
 0x140   : > { %v1769_v63 = vpop.f32.mrf.mxu0  ;;  %v1898_v20 = vrot.slane %v4923_v44, 5  ;;  %v2475_v1 = vrot.slane %v2473_v17, 4 }
 0x141   : > { %v1975_v49 = vpack.c.b16 %v1955_v54, %v1954_v43  ;;  %v2461_v62 = vsel %vm4230_vm4, %v2456_v16, %v4901_v40  ;;  %v2650_v43 = vunpack.c.l.b16 %v2451_v11  ;;  %v4937_v16 = vld [vmem:[%s4202_s6 + $0x54] sm:$0xf] }
 0x142   : > { %v2651_v54 = vunpack.c.l.b16 %v2461_v62 }
 0x143   : > { %v1295_v53 = vpop.f32.mrf.mxu3  ;;  %v825_v29 = vpop.f32.mrf.mxu1  ;;  %3681 = vmatmul.msk.bf16.gmra.mxu2 %vm575_vm3, %v3798_v19  ;;  %v3578_v19 = vld [vmem:[%s4202_s6 + $0x40] sm:$0xe] }
 0x144   : > { %v1339_v23 = vadd.f32 %v1295_v53, %v1117_v41  ;;  %v3746_v41 = vrot.slane %v3738_v42, 9  ;;  %v826_v2 = vadd.f32 %v825_v29, %v4582_v45 }
 0x146   : > { %v1076_v50 = vpop.f32.mrf.mxu2  ;;  %v4905_v61 = vadd.f32 %v1769_v63, %v1339_v23  ;;  %v2462_v63 = vshrl.u32 %v4891_v58, 16  ;;  %v3586_v23 = vrot.slane %v3578_v19, 9  ;;  %v2875_v45 = vsel %vm4410_vm7, %v3746_v41, %v2874_v13 }
 0x147   : > { %v1118_v30 = vadd.f32 %v1076_v50, %v824_v8  ;;  %v3799_v8 = vld [vmem:[%s4202_s6 + $0x40] sm:$0xff]  ;;  %v2878_v50 = vsel %vm4410_vm7, %v2876_v25, %v2877_v34  ;;  %v2940_v11 = vunpack.c.l.b16 %v2875_v45  ;;  %v2482_v25 = vshll.u32 %v4937_v16, 16 }
 0x148   : > { %3726 = vmatmul.msk.bf16.gmra.mxu3 %vm575_vm3, %v2670_v37  ;;  %v1772_v3 = vpop.f32.mrf.mxu0  ;;  %v3971_v37 = vld [vmem:[%s4202_s6 + $0x3c] sm:$0x1]  ;;  %v2464_v7 = vrot.slane %v2462_v63, 4  ;;  %v1899_v13 = vsel %vm4410_vm7, %v3586_v23, %v1898_v20 }
 0x149   : > { %v1894_v24 = vrot.slane %v3971_v37, 5 }
 0x14a   : > { %v2465_v62 = vor.u32 %v2464_v7, %v4901_v40  ;;  %v3973_v7 = vld [vmem:[%s4202_s6 + $0x48] sm:$0xf] }
 0x14b   : > { %v1298_v35 = vpop.f32.mrf.mxu3  ;;  %v828_v52 = vpop.f32.mrf.mxu1  ;;  %3755 = vmatmul.msk.bf16.gmra.mxu0 %vm575_vm3, %v2960_v39  ;;  %v2478_v39 = vrot.slane %v2476_v21, 5  ;;  %v1957_v21 = vunpack.c.l.b16 %v1899_v13 }
 0x14c   : > { %v1340_v47 = vadd.f32 %v1298_v35, %v1118_v30  ;;  %v4934_v30 = vld [vmem:[%s4202_s6 + $0x4c] sm:$0x1]  ;;  %v2671_v35 = vpack.c.b16 %v2651_v54, %v2650_v43  ;;  %v829_v63 = vadd.f32 %v828_v52, %v4600_v32  ;;  %v2466_v23 = vrot.slane %v2465_v62, 4  ;;  %v3739_v52 = vld [vmem:[%s4202_s6 + $0x50] sm:$0xe] }
 0x14d   : > { %v2468_v41 = vshll.u32 %v4934_v30, 16  ;;  %v2479_v19 = vor.u32 %v2478_v39, %v2475_v1  ;;  %v2484_v43 = vrot.slane %v2482_v25, 5  ;;  %v2486_v54 = vshrl.u32 %v4937_v16, 16 }
 0x14e   : > { %3595 = vmatmul.msk.bf16.gmra.mxu1 %vm575_vm3, %v1975_v49  ;;  %v4919_v53 = vadd.f32 %v1772_v3, %v1340_v47  ;;  %v1078_v5 = vpop.f32.mrf.mxu2  ;;  %v1895_v49 = vsel %vm4410_vm7, %v1893_v60, %v1894_v24  ;;  %v2941_v47 = vunpack.c.l.b16 %v2878_v50  ;;  %v1901_v1 = vrot.slane %v3973_v7, 5 }
 0x14f   : > { %v1119_v9 = vadd.f32 %v1078_v5, %v826_v2  ;;  %v1956_v17 = vunpack.c.l.b16 %v1895_v49  ;;  %v4952_v5 = vld [vmem:[%s4202_s6 + $0x58] sm:$0xf]  ;;  %v2879_v49 = vrot.slane %v2877_v34, 4  ;;  %v2880_v13 = vrot.slane %v4934_v30, 5 }
 0x150   : > { %v1774_v29 = vpop.f32.mrf.mxu0  ;;  %v2961_v37 = vpack.c.b16 %v2941_v47, %v2940_v11  ;;  %v2492_v39 = vshll.u32 %v4952_v5, 16  ;;  %v3747_v62 = vrot.slane %v3739_v52, 9  ;;  %v2488_v58 = vrot.slane %v2486_v54, 4 }
 0x151   : > { %v1976_v32 = vpack.c.b16 %v1957_v21, %v1956_v17  ;;  %v1900_v17 = vrot.slane %v1898_v20, 4  ;;  %v1903_v21 = vrot.slane %v1901_v1, 4 }
 0x153   : > { %v1300_v3 = vpop.f32.mrf.mxu3  ;;  %v830_v42 = vpop.f32.mrf.mxu1  ;;  %3682 = vmatmul.msk.bf16.gmra.mxu2 %vm575_vm3, %v3799_v8  ;;  %v2480_v8 = vrot.slane %v2479_v19, 4  ;;  %v3974_v19 = vld [vmem:[%s4202_s6 + $0x4c] sm:$0x1]  ;;  %v1902_v20 = vsel %vm4410_vm7, %v1900_v17, %v1901_v1  ;;  %v4999_v17 = vld [vmem:[%s4202_s6 + $0x64] sm:$0xf] }
 0x154   : > { %v1341_v15 = vadd.f32 %v1300_v3, %v1119_v9  ;;  %v2470_v9 = vrot.slane %v2468_v41, 5  ;;  %v2884_v41 = vrot.slane %v4937_v16, 5  ;;  %v1904_v25 = vrot.slane %v3974_v19, 5 }
 0x155   : > { %v2485_v47 = vsel %vm4230_vm4, %v2480_v8, %v2484_v43  ;;  %v4980_v8 = vld [vmem:[%s4202_s6 + $0x5c] sm:$0x1] }
 0x156   : > { %v1081_v2 = vpop.f32.mrf.mxu2  ;;  %v4954_v60 = vadd.f32 %v1774_v29, %v1341_v15  ;;  %v2496_v29 = vshrl.u32 %v4952_v5, 16  ;;  %v3649_v15 = vld [vmem:[%s4202_s6 + $0x48] sm:$0xf]  ;;  %v2471_v11 = vsel %vm4230_vm4, %v2466_v23, %v2470_v9  ;;  %v2653_v9 = vunpack.c.l.b16 %v2485_v47 }
 0x157   : > { %v1120_v24 = vadd.f32 %v1081_v2, %v829_v63  ;;  %v831_v63 = vadd.f32 %v830_v42, %v4620_v38  ;;  %v2494_v2 = vrot.slane %v2492_v39, 5  ;;  %v2652_v16 = vunpack.c.l.b16 %v2471_v11 }
 0x158   : > { %3727 = vmatmul.msk.bf16.gmra.mxu3 %vm575_vm3, %v2671_v35  ;;  %v1777_v40 = vpop.f32.mrf.mxu0  ;;  %v3800_v35 = vld [vmem:[%s4202_s6 + $0x4c] sm:$0xf0]  ;;  %v2881_v38 = vsel %vm4410_vm7, %v2879_v49, %v2880_v13  ;;  %v2885_v42 = vsel %vm4410_vm7, %v3747_v62, %v2884_v41  ;;  %v1905_v54 = vsel %vm4410_vm7, %v1903_v21, %v1904_v25  ;;  %v2502_v7 = vshll.u32 %v4980_v8, 16 }
 0x159   : > { %v3650_v23 = vor.u32 %v3800_v35, %v3649_v15  ;;  %v2943_v49 = vunpack.c.l.b16 %v2885_v42  ;;  %v1958_v13 = vunpack.c.l.b16 %v1902_v20  ;;  %v1959_v15 = vunpack.c.l.b16 %v1905_v54 }
 0x15a   : > { %v2504_v47 = vrot.slane %v2502_v7, 5  ;;  %v2886_v21 = vrot.slane %v2884_v41, 4  ;;  %v2890_v20 = vrot.slane %v4980_v8, 5 }
 0x15b   : > { %v1303_v45 = vpop.f32.mrf.mxu3  ;;  %v833_v50 = vpop.f32.mrf.mxu1  ;;  %3756 = vmatmul.msk.bf16.gmra.mxu0 %vm575_vm3, %v2961_v37  ;;  %v2498_v37 = vrot.slane %v2496_v29, 4  ;;  %v2672_v29 = vpack.c.b16 %v2653_v9, %v2652_v16  ;;  %v3975_v16 = vld [vmem:[%s4202_s6 + $0x54] sm:$0xf] }
 0x15c   : > { %v1342_v3 = vadd.f32 %v1303_v45, %v1120_v24  ;;  %v1908_v9 = vrot.slane %v3975_v16, 5 }
 0x15d   : > { %v2499_v45 = vor.u32 %v2498_v37, %v2494_v2 }
 0x15e   : > { %3596 = vmatmul.msk.bf16.gmra.mxu1 %vm575_vm3, %v1976_v32  ;;  %v4975_v34 = vadd.f32 %v1777_v40, %v1342_v3  ;;  %v1083_v30 = vpop.f32.mrf.mxu2  ;;  %v2489_v40 = vor.u32 %v2488_v58, %v2484_v43  ;;  %v2942_v3 = vunpack.c.l.b16 %v2881_v38  ;;  %v834_v43 = vadd.f32 %v833_v50, %v4640_v31 }
 0x15f   : > { %v1121_v24 = vadd.f32 %v1083_v30, %v831_v63  ;;  %v2500_v11 = vrot.slane %v2499_v45, 4  ;;  %v3707_v63 = vld [vmem:[%s4202_s6 + $0x60] sm:$0xf]  ;;  %v2887_v30 = vrot.slane %v4952_v5, 5  ;;  %v1977_v31 = vpack.c.b16 %v1959_v15, %v1958_v13  ;;  %v3579_v5 = vld [vmem:[%s4202_s6 + $0x50] sm:$0xe] }
 0x160   : > { %v1779_v52 = vpop.f32.mrf.mxu0  ;;  %v2490_v35 = vrot.slane %v2489_v40, 4  ;;  %v2962_v19 = vpack.c.b16 %v2943_v49, %v2942_v3  ;;  %v2510_v42 = vshll.u32 %v3707_v63, 16  ;;  %v2516_v40 = vshll.u32 %v4999_v17, 16 }
 0x161   : > { %v2888_v7 = vsel %vm4410_vm7, %v2886_v21, %v2887_v30  ;;  %v3587_v3 = vrot.slane %v3579_v5, 9  ;;  %v1910_v49 = vrot.slane %v1908_v9, 4 }
 0x162   : > { %v2495_v50 = vsel %vm4230_vm4, %v2490_v35, %v2494_v2  ;;  %v2889_v2 = vrot.slane %v2887_v30, 4  ;;  %v2512_v8 = vrot.slane %v2510_v42, 5 }
 0x163   : > { %v1305_v32 = vpop.f32.mrf.mxu3  ;;  %v835_v44 = vpop.f32.mrf.mxu1  ;;  %3683 = vmatmul.msk.bf16.gmra.mxu2 %vm575_vm3, %v3650_v23  ;;  %v2505_v23 = vsel %vm4230_vm4, %v2500_v11, %v2504_v47  ;;  %v2654_v41 = vunpack.c.l.b16 %v2495_v50  ;;  %v2518_v11 = vrot.slane %v2516_v40, 5 }
 0x164   : > { %v1343_v39 = vadd.f32 %v1305_v32, %v1121_v24  ;;  %v2520_v32 = vshrl.u32 %v4999_v17, 16  ;;  %v836_v54 = vadd.f32 %v835_v44, %v4657_v12  ;;  %v2655_v45 = vunpack.c.l.b16 %v2505_v23 }
 0x165   : > { %v2891_v47 = vsel %vm4410_vm7, %v2889_v2, %v2890_v20 }
 0x166   : > { %v1086_v1 = vpop.f32.mrf.mxu2  ;;  %v4993_v62 = vadd.f32 %v1779_v52, %v1343_v39  ;;  %v2507_v52 = vshrl.u32 %v3707_v63, 16  ;;  %v2522_v12 = vrot.slane %v2520_v32, 4  ;;  %v2673_v63 = vpack.c.b16 %v2655_v45, %v2654_v41  ;;  %v3711_v32 = vld [vmem:[%s4202_s6 + $0x70] sm:$0xf] }
 0x167   : > { %v1122_v25 = vadd.f32 %v1086_v1, %v834_v43  ;;  %v3976_v43 = vld [vmem:[%s4202_s6 + $0x58] sm:$0xf] }
 0x168   : > { %3728 = vmatmul.msk.bf16.gmra.mxu3 %vm575_vm3, %v2672_v29  ;;  %v1782_v58 = vpop.f32.mrf.mxu0  ;;  %v1911_v13 = vrot.slane %v3976_v43, 5  ;;  %v2509_v15 = vrot.slane %v2507_v52, 4  ;;  %v3801_v1 = vld [vmem:[%s4202_s6 + $0x54] sm:$0xff]  ;;  %v2523_v16 = vor.u32 %v2522_v12, %v2518_v11 }
 0x16a   : > { %v1912_v50 = vsel %vm4410_vm7, %v1910_v49, %v1911_v13  ;;  %v2513_v23 = vor.u32 %v2512_v8, %v2509_v15  ;;  %v2524_v20 = vrot.slane %v2523_v16, 4  ;;  %v2541_v49 = vshrl.u32 %v3711_v32, 16 }
 0x16b   : > { %v1308_v37 = vpop.f32.mrf.mxu3  ;;  %v838_v24 = vpop.f32.mrf.mxu1  ;;  %3757 = vmatmul.msk.bf16.gmra.mxu0 %vm575_vm3, %v2962_v19  ;;  %v5022_v19 = vld [vmem:[%s4202_s6 + $0x68] sm:$0xf]  ;;  %v1961_v42 = vunpack.c.l.b16 %v1912_v50 }
 0x16c   : > { %v1344_v38 = vadd.f32 %v1308_v37, %v1122_v25  ;;  %v2945_v37 = vunpack.c.l.b16 %v2891_v47  ;;  %v2526_v52 = vshll.u32 %v5022_v19, 16  ;;  %v2514_v2 = vrot.slane %v2513_v23, 4  ;;  %v3580_v47 = vld [vmem:[%s4202_s6 + $0x60] sm:$0xe] }
 0x16d   : > { %v1913_v23 = vrot.slane %v1911_v13, 4  ;;  %v3588_v16 = vrot.slane %v3580_v47, 9 }
 0x16e   : > { %3597 = vmatmul.msk.bf16.gmra.mxu1 %vm575_vm3, %v1977_v31  ;;  %v5015_v39 = vadd.f32 %v1782_v58, %v1344_v38  ;;  %v1088_v29 = vpop.f32.mrf.mxu2  ;;  %v2944_v58 = vunpack.c.l.b16 %v2888_v7  ;;  %v1909_v31 = vsel %vm4410_vm7, %v3587_v3, %v1908_v9  ;;  %v839_v38 = vadd.f32 %v838_v24, %v4570_v26  ;;  %v3740_v7 = vld [vmem:[%s4202_s6 + $0x60] sm:$0xe] }
 0x16f   : > { %v1123_v35 = vadd.f32 %v1088_v29, %v836_v54  ;;  %v1960_v5 = vunpack.c.l.b16 %v1909_v31  ;;  %v2528_v45 = vrot.slane %v2526_v52, 5  ;;  %v2894_v29 = vrot.slane %v4999_v17, 5  ;;  %v5051_v52 = vld [vmem:[%s4202_s6 + $0x64] sm:$0xf] }
 0x170   : > { %v1784_v44 = vpop.f32.mrf.mxu0  ;;  %v2963_v9 = vpack.c.b16 %v2945_v37, %v2944_v58  ;;  %v2530_v3 = vshrl.u32 %v5022_v19, 16  ;;  %v2519_v8 = vsel %vm4230_vm4, %v2514_v2, %v2518_v11  ;;  %v3748_v12 = vrot.slane %v3740_v7, 9  ;;  %v3977_v58 = vld [vmem:[%s4202_s6 + $0x5c] sm:$0x1] }
 0x171   : > { %v1978_v24 = vpack.c.b16 %v1961_v42, %v1960_v5  ;;  %v2529_v17 = vsel %vm4230_vm4, %v2524_v20, %v2528_v45  ;;  %v1914_v31 = vrot.slane %v3977_v58, 5  ;;  %v2543_v11 = vrot.slane %v2541_v49, 4 }
 0x173   : > { %v1310_v25 = vpop.f32.mrf.mxu3  ;;  %v840_v30 = vpop.f32.mrf.mxu1  ;;  %3684 = vmatmul.msk.bf16.gmra.mxu2 %vm575_vm3, %v3801_v1 }
 0x174   : > { %v1345_v21 = vadd.f32 %v1310_v25, %v1123_v35  ;;  %v2544_v35 = vshll.u32 %v3711_v32, 16  ;;  %v2897_v25 = vrot.slane %v5022_v19, 5  ;;  %v841_v50 = vadd.f32 %v840_v30, %v4589_v55  ;;  %v5055_v19 = vld [vmem:[%s4202_s6 + $0x6c] sm:$0x1]  ;;  %v5059_v55 = vld [vmem:[%s4202_s6 + $0x74] sm:$0xf] }
 0x175   : > { %v2656_v32 = vunpack.c.l.b16 %v2519_v8  ;;  %v2536_v20 = vshll.u32 %v5055_v19, 16 }
 0x176   : > { %v1091_v40 = vpop.f32.mrf.mxu2  ;;  %v5036_v26 = vadd.f32 %v1784_v44, %v1345_v21  ;;  %v2896_v44 = vrot.slane %v2894_v29, 4  ;;  %v2546_v5 = vrot.slane %v2544_v35, 5 }
 0x177   : > { %v1124_v41 = vadd.f32 %v1091_v40, %v839_v38  ;;  %v1918_v38 = vrot.slane %v5051_v52, 5  ;;  %v3802_v40 = vld [vmem:[%s4202_s6 + $0x60] sm:$0xff] }
 0x178   : > { %3729 = vmatmul.msk.bf16.gmra.mxu3 %vm575_vm3, %v2673_v63  ;;  %v1787_v54 = vpop.f32.mrf.mxu0  ;;  %v2532_v63 = vrot.slane %v2530_v3, 4  ;;  %v2898_v13 = vsel %vm4410_vm7, %v2896_v44, %v2897_v25  ;;  %v1915_v3 = vsel %vm4410_vm7, %v1913_v23, %v1914_v31  ;;  %v2547_v49 = vor.u32 %v2546_v5, %v2543_v11 }
 0x179   : > { %v1962_v47 = vunpack.c.l.b16 %v1915_v3  ;;  %v2538_v44 = vrot.slane %v2536_v20, 5  ;;  %v3803_v3 = vld [vmem:[%s4202_s6 + $0x6c] sm:$0xf0] }
 0x17a   : > { %v2533_v2 = vor.u32 %v2532_v63, %v2528_v45  ;;  %v2548_v58 = vrot.slane %v2547_v49, 4  ;;  %v3980_v49 = vld [vmem:[%s4202_s6 + $0x6c] sm:$0x1] }
 0x17b   : > { %v1313_v43 = vpop.f32.mrf.mxu3  ;;  %v843_v15 = vpop.f32.mrf.mxu1  ;;  %3758 = vmatmul.msk.bf16.gmra.mxu0 %vm575_vm3, %v2963_v9  ;;  %v2657_v9 = vunpack.c.l.b16 %v2529_v17 }
 0x17c   : > { %v1346_v1 = vadd.f32 %v1313_v43, %v1124_v41  ;;  %v2895_v41 = vsel %vm4410_vm7, %v3748_v12, %v2894_v29  ;;  %v2550_v43 = vshll.u32 %v5059_v55, 16  ;;  %v2534_v8 = vrot.slane %v2533_v2, 4 }
 0x17d   : > { %v2674_v35 = vpack.c.b16 %v2657_v9, %v2656_v32  ;;  %v2946_v45 = vunpack.c.l.b16 %v2895_v41  ;;  %v844_v12 = vadd.f32 %v843_v15, %v4611_v46  ;;  %v3741_v15 = vld [vmem:[%s4202_s6 + $0x70] sm:$0xe]  ;;  %v3979_v41 = vld [vmem:[%s4202_s6 + $0x68] sm:$0xf]  ;;  %v2554_v2 = vshrl.u32 %v5059_v55, 16 }
 0x17e   : > { %3598 = vmatmul.msk.bf16.gmra.mxu1 %vm575_vm3, %v1978_v24  ;;  %v5048_v21 = vadd.f32 %v1787_v54, %v1346_v1  ;;  %v1093_v37 = vpop.f32.mrf.mxu2  ;;  %v1919_v24 = vsel %vm4410_vm7, %v3588_v16, %v1918_v38  ;;  %v2947_v1 = vunpack.c.l.b16 %v2898_v13  ;;  %v2552_v31 = vrot.slane %v2550_v43, 5  ;;  %v5079_v16 = vld [vmem:[%s4202_s6 + $0x78] sm:$0xf] }
 0x17f   : > { %v1125_v42 = vadd.f32 %v1093_v37, %v841_v50  ;;  %v1963_v17 = vunpack.c.l.b16 %v1919_v24  ;;  %v2539_v46 = vsel %vm4230_vm4, %v2534_v8, %v2538_v44  ;;  %v1921_v13 = vrot.slane %v3979_v41, 5 }
 0x180   : > { %v1789_v30 = vpop.f32.mrf.mxu0  ;;  %v2964_v50 = vpack.c.b16 %v2947_v1, %v2946_v45  ;;  %v2553_v9 = vsel %vm4230_vm4, %v2548_v58, %v2552_v31  ;;  %v2560_v24 = vshll.u32 %v5079_v16, 16  ;;  %v1924_v43 = vrot.slane %v3980_v49, 5 }
 0x181   : > { %v1979_v5 = vpack.c.b16 %v1963_v17, %v1962_v47  ;;  %v2658_v45 = vunpack.c.l.b16 %v2539_v46  ;;  %v2659_v1 = vunpack.c.l.b16 %v2553_v9  ;;  %v1920_v17 = vrot.slane %v1918_v38, 4 }
 0x182   : > { %v1923_v44 = vrot.slane %v1921_v13, 4 }
 0x183   : > { %v1315_v54 = vpop.f32.mrf.mxu3  ;;  %v845_v7 = vpop.f32.mrf.mxu1  ;;  %3685 = vmatmul.msk.bf16.gmra.mxu2 %vm575_vm3, %v3802_v40  ;;  %v1922_v38 = vsel %vm4410_vm7, %v1920_v17, %v1921_v13 }
 0x184   : > { %v1347_v29 = vadd.f32 %v1315_v54, %v1125_v42  ;;  %v2899_v42 = vrot.slane %v2897_v25, 4  ;;  %v3661_v54 = vld [vmem:[%s4202_s6 + $0x68] sm:$0xf]  ;;  %v2564_v25 = vshrl.u32 %v5079_v16, 16 }
 0x185   : > { %v3662_v47 = vor.u32 %v3803_v3, %v3661_v54  ;;  %v1964_v54 = vunpack.c.l.b16 %v1922_v38 }
 0x186   : > { %v1096_v63 = vpop.f32.mrf.mxu2  ;;  %v5076_v37 = vadd.f32 %v1789_v30, %v1347_v29  ;;  %v2900_v30 = vrot.slane %v5055_v19, 5  ;;  %v3749_v29 = vrot.slane %v3741_v15, 9  ;;  %v846_v19 = vadd.f32 %v845_v7, %v4628_v14 }
 0x187   : > { %v1126_v11 = vadd.f32 %v1096_v63, %v844_v12  ;;  %v2556_v63 = vrot.slane %v2554_v2, 4  ;;  %v2566_v14 = vrot.slane %v2564_v25, 4 }
 0x188   : > { %3730 = vmatmul.msk.bf16.gmra.mxu3 %vm575_vm3, %v2674_v35  ;;  %v1792_v23 = vpop.f32.mrf.mxu0  ;;  %v2904_v35 = vrot.slane %v5059_v55, 5  ;;  %v2901_v55 = vsel %vm4410_vm7, %v2899_v42, %v2900_v30 }
 0x189   : > { %v2948_v15 = vunpack.c.l.b16 %v2901_v55  ;;  %v2557_v42 = vor.u32 %v2556_v63, %v2552_v31  ;;  %v3981_v55 = vld [vmem:[%s4202_s6 + $0x74] sm:$0xf] }
 0x18b   : > { %v1318_v40 = vpop.f32.mrf.mxu3  ;;  %v848_v32 = vpop.f32.mrf.mxu1  ;;  %3759 = vmatmul.msk.bf16.gmra.mxu0 %vm575_vm3, %v2964_v50  ;;  %v2562_v50 = vrot.slane %v2560_v24, 5  ;;  %v3715_v24 = vld [vmem:[%s4202_s6 + $0x80] sm:$0xf]  ;;  %v2558_v49 = vrot.slane %v2557_v42, 4 }
 0x18c   : > { %v1348_v20 = vadd.f32 %v1318_v40, %v1126_v11  ;;  %v2905_v11 = vsel %vm4410_vm7, %v3749_v29, %v2904_v35  ;;  %v1925_v40 = vsel %vm4410_vm7, %v1923_v44, %v1924_v43 }
 0x18d   : > { %v2949_v30 = vunpack.c.l.b16 %v2905_v11  ;;  %v2567_v41 = vor.u32 %v2566_v14, %v2562_v50  ;;  %v1965_v3 = vunpack.c.l.b16 %v1925_v40  ;;  %v2563_v63 = vsel %vm4230_vm4, %v2558_v49, %v2562_v50 }
 0x18e   : > { %3599 = vmatmul.msk.bf16.gmra.mxu1 %vm575_vm3, %v1979_v5  ;;  %v5098_v8 = vadd.f32 %v1792_v23, %v1348_v20  ;;  %v1098_v12 = vpop.f32.mrf.mxu2  ;;  %v5107_v5 = vld [vmem:[%s4202_s6 + $0x7c] sm:$0x1]  ;;  %v2675_v23 = vpack.c.b16 %v2659_v1, %v2658_v45  ;;  %v849_v20 = vadd.f32 %v848_v32, %v4650_v51  ;;  %v2907_v1 = vrot.slane %v5079_v16, 5  ;;  %v3581_v16 = vld [vmem:[%s4202_s6 + $0x70] sm:$0xe] }
 0x18f   : > { %v1127_v58 = vadd.f32 %v1098_v12, %v846_v19  ;;  %v2570_v2 = vshll.u32 %v5107_v5, 16  ;;  %v2965_v31 = vpack.c.b16 %v2949_v30, %v2948_v15  ;;  %v2568_v29 = vrot.slane %v2567_v41, 4  ;;  %v5122_v12 = vld [vmem:[%s4202_s6 + $0x84] sm:$0xf] }
 0x190   : > { %v1794_v7 = vpop.f32.mrf.mxu0  ;;  %v2575_v51 = vshrl.u32 %v3715_v24, 16  ;;  %v2578_v32 = vshll.u32 %v3715_v24, 16  ;;  %v1928_v14 = vrot.slane %v3981_v55, 5  ;;  %v2909_v15 = vrot.slane %v2907_v1, 4 }
 0x191   : > { %v2572_v19 = vrot.slane %v2570_v2, 5  ;;  %v2910_v38 = vrot.slane %v5107_v5, 5  ;;  %v2660_v42 = vunpack.c.l.b16 %v2563_v63  ;;  %v3589_v2 = vrot.slane %v3581_v16, 9 }
 0x192   : > { %v2577_v50 = vrot.slane %v2575_v51, 4 }
 0x193   : > { %v1320_v46 = vpop.f32.mrf.mxu3  ;;  %v850_v52 = vpop.f32.mrf.mxu1  ;;  %3686 = vmatmul.msk.bf16.gmra.mxu2 %vm575_vm3, %v3662_v47  ;;  %v1980_v47 = vpack.c.b16 %v1965_v3, %v1964_v54  ;;  %v2573_v11 = vsel %vm4230_vm4, %v2568_v29, %v2572_v19  ;;  %v3982_v54 = vld [vmem:[%s4202_s6 + $0x78] sm:$0xf] }
 0x194   : > { %v1349_v9 = vadd.f32 %v1320_v46, %v1127_v58  ;;  %v2906_v58 = vrot.slane %v2904_v35, 4  ;;  %v2588_v46 = vshrl.u32 %v5122_v12, 16  ;;  %v2580_v35 = vrot.slane %v2578_v32, 5 }
 0x195   : > { %v851_v40 = vadd.f32 %v850_v52, %v4667_v10  ;;  %v2661_v41 = vunpack.c.l.b16 %v2573_v11  ;;  %v1931_v3 = vrot.slane %v3982_v54, 5  ;;  %v2911_v52 = vsel %vm4410_vm7, %v2909_v15, %v2910_v38 }
 0x196   : > { %v1101_v25 = vpop.f32.mrf.mxu2  ;;  %v5117_v13 = vadd.f32 %v1794_v7, %v1349_v9  ;;  %v2908_v5 = vsel %vm4410_vm7, %v2906_v58, %v2907_v1  ;;  %v2581_v29 = vor.u32 %v2580_v35, %v2577_v50  ;;  %v2951_v63 = vunpack.c.l.b16 %v2911_v52 }
 0x197   : > { %v1128_v43 = vadd.f32 %v1101_v25, %v849_v20  ;;  %v1930_v20 = vrot.slane %v1928_v14, 4  ;;  %v3804_v25 = vld [vmem:[%s4202_s6 + $0x74] sm:$0xff]  ;;  %v2950_v51 = vunpack.c.l.b16 %v2908_v5  ;;  %v3582_v5 = vld [vmem:[%s4202_s6 + $0x80] sm:$0xe] }
 0x198   : > { %3731 = vmatmul.msk.bf16.gmra.mxu3 %vm575_vm3, %v2675_v23  ;;  %v1797_v45 = vpop.f32.mrf.mxu0  ;;  %v2584_v23 = vshll.u32 %v5122_v12, 16 }
 0x199   : > { %v1932_v1 = vsel %vm4410_vm7, %v1930_v20, %v1931_v3  ;;  %v2966_v38 = vpack.c.b16 %v2951_v63, %v2950_v51  ;;  %v3983_v63 = vld [vmem:[%s4202_s6 + $0x7c] sm:$0x1] }
 0x19a   : > { %v2586_v49 = vrot.slane %v2584_v23, 5  ;;  %v1967_v16 = vunpack.c.l.b16 %v1932_v1  ;;  %v3742_v23 = vld [vmem:[%s4202_s6 + $0x80] sm:$0xe] }
 0x19b   : > { %v1323_v17 = vpop.f32.mrf.mxu3  ;;  %v2032_v44 = vpop.f32.mrf.mxu1  ;;  %3760 = vmatmul.msk.bf16.gmra.mxu0 %vm575_vm3, %v2965_v31  ;;  %v2590_v31 = vrot.slane %v2588_v46, 4  ;;  %v2914_v46 = vrot.slane %v5122_v12, 5 }
 0x19c   : > { %v1350_v7 = vadd.f32 %v1323_v17, %v1128_v43  ;;  %v5145_v43 = vld [vmem:[%s4202_s6 + $0x88] sm:$0xf] }
 0x19d   : > { %v2591_v58 = vor.u32 %v2590_v31, %v2586_v49  ;;  %v2594_v55 = vshll.u32 %v5145_v43, 16 }
 0x19e   : > { %3600 = vmatmul.msk.bf16.gmra.mxu1 %vm575_vm3, %v1980_v47  ;;  %v5136_v9 = vadd.f32 %v1797_v45, %v1350_v7  ;;  %v1103_v30 = vpop.f32.mrf.mxu2  ;;  %v2676_v45 = vpack.c.b16 %v2661_v41, %v2660_v42  ;;  %v1929_v47 = vsel %vm4410_vm7, %v3589_v2, %v1928_v14  ;;  %v2582_v7 = vrot.slane %v2581_v29, 4  ;;  %v3719_v2 = vld [vmem:[%s4202_s6 + $0x90] sm:$0xf] }
 0x19f   : > { %v1129_v24 = vadd.f32 %v1103_v30, %v851_v40  ;;  %v1966_v11 = vunpack.c.l.b16 %v1929_v47  ;;  %v2092_v14 = vadd.f32 %v2032_v44, %v4686_v59  ;;  %v2592_v50 = vrot.slane %v2591_v58, 4 }
 0x1a0   : > { %v1799_v10 = vpop.f32.mrf.mxu0  ;;  %v5157_v35 = vrot.slane %v2594_v55, 5  ;;  %v2587_v42 = vsel %vm4230_vm4, %v2582_v7, %v2586_v49  ;;  %v3750_v30 = vrot.slane %v3742_v23, 9  ;;  %v2917_v41 = vrot.slane %v5145_v43, 5  ;;  %v5181_v7 = vld [vmem:[%s4202_s6 + $0x84] sm:$0xf] }
 0x1a1   : > { %v1981_v54 = vpack.c.b16 %v1967_v16, %v1966_v11  ;;  %v2916_v59 = vrot.slane %v2914_v46, 4  ;;  %v2598_v44 = vshrl.u32 %v5145_v43, 16  ;;  %v2609_v31 = vshrl.u32 %v3719_v2, 16  ;;  %v5186_v23 = vld [vmem:[%s4202_s6 + $0x8c] sm:$0x1] }
 0x1a2   : > { %v2612_v49 = vshll.u32 %v3719_v2, 16  ;;  %v2597_v52 = vsel %vm4230_vm4, %v2592_v50, %v5157_v35  ;;  %v2915_v29 = vsel %vm4410_vm7, %v3750_v30, %v2914_v46  ;;  %v1934_v58 = vrot.slane %v3983_v63, 5 }
 0x1a3   : > { %v1325_v19 = vpop.f32.mrf.mxu3  ;;  %v2034_v32 = vpop.f32.mrf.mxu1  ;;  %3687 = vmatmul.msk.bf16.gmra.mxu2 %vm575_vm3, %v3804_v25  ;;  %v2918_v51 = vsel %vm4410_vm7, %v2916_v59, %v2917_v41  ;;  %v2600_v47 = vrot.slane %v2598_v44, 4  ;;  %v3590_v55 = vrot.slane %v3582_v5, 9  ;;  %v1938_v11 = vrot.slane %v5181_v7, 5 }
 0x1a4   : > { %v1351_v17 = vadd.f32 %v1325_v19, %v1129_v24  ;;  %v2611_v46 = vrot.slane %v2609_v31, 4  ;;  %v2953_v30 = vunpack.c.l.b16 %v2918_v51  ;;  %v2604_v44 = vshll.u32 %v5186_v23, 16 }
 0x1a5   : > { %v1939_v59 = vsel %vm4410_vm7, %v3590_v55, %v1938_v11 }
 0x1a6   : > { %v2254_v15 = vpop.f32.mrf.mxu2  ;;  %v5163_v20 = vadd.f32 %v1799_v10, %v1351_v17  ;;  %v2662_v10 = vunpack.c.l.b16 %v2587_v42  ;;  %v1933_v17 = vrot.slane %v1931_v3, 4  ;;  %v5194_v3 = vld [vmem:[%s5374_s2] ss:$0 sm:$0xff]  ;;  %v2952_v42 = vunpack.c.l.b16 %v2915_v29 }
 0x1a7   : > { %v2314_v12 = vadd.f32 %v2254_v15, %v2092_v14  ;;  %v2614_v15 = vrot.slane %v2612_v49, 5 }
 0x1a8   : > { %3732 = vmatmul.msk.bf16.gmra.mxu3 %vm575_vm3, %v2676_v45  ;;  %v3018_v40 = vpop.f32.mrf.mxu0  ;;  %v2093_v45 = vadd.f32 %v2034_v32, %v4701_v56  ;;  %v3805_v56 = vld [vmem:[%s4202_s6 + $0x80] sm:$0xff]  ;;  %v2663_v32 = vunpack.c.l.b16 %v2597_v52 }
 0x1a9   : > { %v2615_v31 = vor.u32 %v2614_v15, %v2611_v46  ;;  %v3743_v15 = vld [vmem:[%s4202_s6 + $0x90] sm:$0xe] }
 0x1aa   : > { %v2677_v5 = vpack.c.b16 %v2663_v32, %v2662_v10 }
 0x1ab   : > { %v2728_v24 = vpop.f32.mrf.mxu3  ;;  %v2037_v25 = vpop.f32.mrf.mxu1  ;;  %3761 = vmatmul.msk.bf16.gmra.mxu0 %vm575_vm3, %v2966_v38  ;;  %v5189_v38 = vld [vmem:[%s4202_s6 + $0x94] sm:$0xf]  ;;  %v2616_v63 = vrot.slane %v2615_v31, 4  ;;  %v3751_v31 = vrot.slane %v3743_v15, 9 }
 0x1ac   : > { %v2788_v19 = vadd.f32 %v2728_v24, %v2314_v12  ;;  %v2618_v49 = vshll.u32 %v5189_v38, 16  ;;  %v2094_v10 = vadd.f32 %v2037_v25, %v4717_v28  ;;  %v2919_v25 = vrot.slane %v2917_v41, 4 }
 0x1ad   : > { %v2924_v43 = vrot.slane %v5189_v38, 5 }
 0x1ae   : > { %3601 = vmatmul.msk.bf16.gmra.mxu1 %vm575_vm3, %v1981_v54  ;;  %v2256_v1 = vpop.f32.mrf.mxu2  ;;  %v3078_v50 = vadd.f32 %v3018_v40, %v2788_v19  ;;  %v1935_v54 = vsel %vm4410_vm7, %v1933_v17, %v1934_v58  ;;  %v2601_v40 = vor.u32 %v2600_v47, %v5157_v35  ;;  %v2967_v35 = vpack.c.b16 %v2953_v30, %v2952_v42  ;;  %v3985_v30 = vld [vmem:[%s4202_s6 + $0x88] sm:$0xf] }
 0x1af   : > { %v2315_v16 = vadd.f32 %v2256_v1, %v2093_v45  ;;  %v1968_v19 = vunpack.c.l.b16 %v1935_v54  ;;  %v1969_v45 = vunpack.c.l.b16 %v1939_v59  ;;  %v2606_v1 = vrot.slane %v2604_v44, 5  ;;  %v3673_v59 = vld [vmem:[%s4202_s6 + $0x88] sm:$0xf] }
 0x1b0   : > { %v3020_v14 = vpop.f32.mrf.mxu0  ;;  %v3106_v52 = vadd.f32 %v5194_v3, %v3078_v50  ;;  %v2602_v47 = vrot.slane %v2601_v40, 4  ;;  %v5215_v58 = vrot.slane %v2618_v49, 5  ;;  %v2920_v44 = vrot.slane %v5186_v23, 5 }
 0x1b1   : > { %v1982_v46 = vpack.c.b16 %v1969_v45, %v1968_v19 }
 0x1b2   : > { %v2607_v28 = vsel %vm4230_vm4, %v2602_v47, %v2606_v1  ;;  %v2621_v40 = vsel %vm4230_vm4, %v2616_v63, %v5215_v58 }
 0x1b3   : > { %v2730_v2 = vpop.f32.mrf.mxu3  ;;  %v2039_v12 = vpop.f32.mrf.mxu1  ;;  %3688 = vmatmul.msk.bf16.gmra.mxu2 %vm575_vm3, %v3805_v56  ;;  %v2664_v23 = vunpack.c.l.b16 %v2607_v28  ;;  %v2665_v45 = vunpack.c.l.b16 %v2621_v40 }
 0x1b4   : > { %v2789_v24 = vadd.f32 %v2730_v2, %v2315_v16  ;;  %v3130_v16 = vmax.f32 %v3106_v52, 0.0  ;;  %v1941_v2 = vrot.slane %v3985_v30, 5 }
 0x1b5   : > { %v2678_v7 = vpack.c.b16 %v2665_v45, %v2664_v23 }
 0x1b6   : > { %v3079_v29 = vadd.f32 %v3020_v14, %v2789_v24  ;;  %v2259_v51 = vpop.f32.mrf.mxu2  ;;  %v5219_v14 = vld [vmem:[%s4202_s6 + $0x98] sm:$0xf]  ;;  %v2622_v24 = vshrl.u32 %v5189_v38, 16  ;;  %v1940_v38 = vrot.slane %v1938_v11, 4 }
 0x1b7   : > { %v2316_v32 = vadd.f32 %v2259_v51, %v2094_v10  ;;  %v2628_v41 = vshll.u32 %v5219_v14, 16  ;;  %v2632_v49 = vshrl.u32 %v5219_v14, 16  ;;  %v3986_v51 = vld [vmem:[%s4202_s6 + $0x8c] sm:$0x1]  ;;  %v2927_v45 = vrot.slane %v5219_v14, 5 }
 0x1b8   : > { %v3107_v17 = vadd.f32 %v5194_v3, %v3079_v29  ;;  %3733 = vmatmul.msk.bf16.gmra.mxu3 %vm575_vm3, %v2677_v5  ;;  %v3023_v55 = vpop.f32.mrf.mxu0  ;;  %v3806_v5 = vld [vmem:[%s4202_s6 + $0x8c] sm:$0xf0]  ;;  %v2095_v29 = vadd.f32 %v2039_v12, %v4740_v4  ;;  %v1944_v47 = vrot.slane %v3986_v51, 5  ;;  %v2624_v10 = vrot.slane %v2622_v24, 4 }
 0x1b9   : > { %v2925_v4 = vsel %vm4410_vm7, %v3751_v31, %v2924_v43  ;;  %v2630_v12 = vrot.slane %v2628_v41, 5 }
 0x1ba   : > { %v3131_v56 = vmax.f32 %v3107_v17, 0.0  ;;  %v3674_v17 = vor.u32 %v3806_v5, %v3673_v59  ;;  %v2625_v59 = vor.u32 %v2624_v10, %v5215_v58 }
 0x1bb   : > { %v2733_v50 = vpop.f32.mrf.mxu3  ;;  %v2042_v42 = vpop.f32.mrf.mxu1  ;;  %3762 = vmatmul.msk.bf16.gmra.mxu0 %vm575_vm3, %v2967_v35  ;;  %v1943_v35 = vrot.slane %v1941_v2, 4 }
 0x1bc   : > { %v3811_v54 = vpack.c.bf16 %v3131_v56, %v3130_v16  ;;  %v2790_v52 = vadd.f32 %v2733_v50, %v2316_v32  ;;  %v2921_v16 = vsel %vm4410_vm7, %v2919_v25, %v2920_v44  ;;  %v2634_v56 = vrot.slane %v2632_v49, 4 }
 0x1bd   : > { %v1942_v50 = vsel %vm4410_vm7, %v1940_v38, %v1941_v2  ;;  %v1945_v28 = vsel %vm4410_vm7, %v1943_v35, %v1944_v47  ;;  %v2954_v25 = vunpack.c.l.b16 %v2921_v16  ;;  %v2096_v49 = vadd.f32 %v2042_v42, %v4758_v48 }
 0x1be   : > { %3812 = vst [vmem:[%s5238_s5] sm:$0xff] %v3811_v54   ;;  %3602 = vmatmul.msk.bf16.gmra.mxu1 %vm575_vm3, %v1982_v46  ;;  %v2261_v19 = vpop.f32.mrf.mxu2  ;;  %v3080_v32 = vadd.f32 %v3023_v55, %v2790_v52  ;;  %v3722_v46 = vld [vmem:[%s4202_s6 + $0x9c] sm:$0x1]  ;;  %v2955_v54 = vunpack.c.l.b16 %v2925_v4  ;;  %v2635_v40 = vor.u32 %v2634_v56, %v2630_v12  ;;  %v1970_v5 = vunpack.c.l.b16 %v1942_v50 }
 0x1bf   : > { %v2317_v1 = vadd.f32 %v2261_v19, %v2095_v29  ;;  %v2638_v44 = vshll.u32 %v3722_v46, 16  ;;  %v1971_v31 = vunpack.c.l.b16 %v1945_v28  ;;  %v2626_v29 = vrot.slane %v2625_v59, 4 }
 0x1c0   : > { %v3025_v63 = vpop.f32.mrf.mxu0  ;;  %v3108_v55 = vadd.f32 %v5194_v3, %v3080_v32  ;;  %v2968_v52 = vpack.c.b16 %v2955_v54, %v2954_v25  ;;  %v2636_v19 = vrot.slane %v2635_v40, 4  ;;  %v2929_v16 = vrot.slane %v2927_v45, 4 }
 0x1c1   : > { %v2640_v58 = vrot.slane %v2638_v44, 5  ;;  %v1983_v47 = vpack.c.b16 %v1971_v31, %v1970_v5  ;;  %v2631_v48 = vsel %vm4230_vm4, %v2626_v29, %v2630_v12  ;;  %v2930_v4 = vrot.slane %v3722_v46, 5 }
 0x1c2   : > { %v3132_v38 = vmax.f32 %v3108_v55, 0.0  ;;  %v2666_v50 = vunpack.c.l.b16 %v2631_v48 }
 0x1c3   : > { %v2735_v15 = vpop.f32.mrf.mxu3  ;;  %v2044_v11 = vpop.f32.mrf.mxu1  ;;  %3689 = vmatmul.msk.bf16.gmra.mxu2 %vm575_vm3, %v3674_v17  ;;  %v2641_v42 = vsel %vm4230_vm4, %v2636_v19, %v2640_v58  ;;  %v2931_v36 = vsel %vm4410_vm7, %v2929_v16, %v2930_v4 }
 0x1c4   : > { %v2791_v30 = vadd.f32 %v2735_v15, %v2317_v1  ;;  %v2097_v56 = vadd.f32 %v2044_v11, %v4782_v0  ;;  %v2667_v28 = vunpack.c.l.b16 %v2641_v42  ;;  %v2957_v59 = vunpack.c.l.b16 %v2931_v36 }
 0x1c6   : > { %v3081_v24 = vadd.f32 %v3025_v63, %v2791_v30  ;;  %v2264_v41 = vpop.f32.mrf.mxu2  ;;  %v2926_v63 = vrot.slane %v2924_v43, 4  ;;  %v2679_v0 = vpack.c.b16 %v2667_v28, %v2666_v50 }
 0x1c7   : > { %v2318_v51 = vadd.f32 %v2264_v41, %v2096_v49 }
 0x1c8   : > { %v3109_v2 = vadd.f32 %v5194_v3, %v3081_v24  ;;  %3734 = vmatmul.msk.bf16.gmra.mxu3 %vm575_vm3, %v2678_v7  ;;  %v3028_v23 = vpop.f32.mrf.mxu0  ;;  %v3807_v7 = vld [vmem:[%s4202_s6 + $0x94] sm:$0xff]  ;;  %v2928_v12 = vsel %vm4410_vm7, %v2926_v63, %v2927_v45  ;;  %s3210_s6 = smul.u32 24, %s4065_s15 }
 0x1c9   : > { %v2956_v11 = vunpack.c.l.b16 %v2928_v12 }
 0x1ca   : > { %v3133_v35 = vmax.f32 %v3109_v2, 0.0  ;;  %s3215_s8 = sadd.s32 %s3884_s7, %s3210_s6  ;;  %s4007_s6 = scalar_lea.hbm %s5375_s3, 576 }
 0x1cb   : > { %v2738_v1 = vpop.f32.mrf.mxu3  ;;  %v2047_v17 = vpop.f32.mrf.mxu1  ;;  %3763 = vmatmul.msk.bf16.gmra.mxu0 %vm575_vm3, %v2968_v52  ;;  %v2969_v27 = vpack.c.b16 %v2957_v59, %v2956_v11  ;;  %s3765_s9 = sshll.u32 %s3215_s8, 2 }
 0x1cc   : > { %v3816_v10 = vpack.c.bf16 %v3133_v35, %v3132_v38  ;;  %v2792_v14 = vadd.f32 %v2738_v1, %v2318_v51  ;;  %v2098_v5 = vadd.f32 %v2047_v17, %v4795_v18  ;;  %s3217_s10 = scalar_lea.hbm %s5375_s3, %s3765_s9 }
 0x1cd   : > { %s3220_s20 = sshll.u32 %s3217_s10, 4  ;;  %s3221_s20 = int_to_ptr.hbm [resolvable:$true] %s3220_s20 }
 0x1ce   : > { %3868 = vst [vmem:[%s5238_s5 + $0x8] sm:$0xff] %v3816_v10   ;;  %3603 = vmatmul.msk.bf16.gmra.mxu1 %vm575_vm3, %v1983_v47  ;;  %v2266_v32 = vpop.f32.mrf.mxu2  ;;  %v3082_v43 = vadd.f32 %v3028_v23, %v2792_v14  ;;  %s4001_s24 = sshra.s32 %s3221_s20, 4  ;;  %s4002_s24 = int_to_ptr.hbm [resolvable:$true] %s4001_s24 }
 0x1cf   : > { %v2319_v15 = vadd.f32 %v2266_v32, %v2097_v56  ;;  %s4003_s27 = scalar_lea.hbm %s4002_s24, 96  ;;  %p4008_p2 = scmp.lt.s32.totalorder %s4002_s24, %s5375_s3 }
 0x1d0   : > { %v3030_v30 = vpop.f32.mrf.mxu0  ;;  %v3110_v40 = vadd.f32 %v5194_v3, %v3082_v43  ;;  %p4004_p13 = scmp.ne.s32.totalorder %s4002_s24, %s4003_s27  ;;  %p4009_p4 = scmp.lt.s32.totalorder %s4007_s6, %s4003_s27 }
 0x1d2   : > { %v3134_v41 = vmax.f32 %v3110_v40, 0.0  ;;  %p4005_p0 = pnand %p4004_p13, %p4156_p3  ;;  %p4010_p5 = por %p4009_p4, %p4008_p2 }
 0x1d3   : > { %v2740_v46 = vpop.f32.mrf.mxu3  ;;  %v2049_v25 = vpop.f32.mrf.mxu1  ;;  %3690 = vmatmul.msk.bf16.gmra.mxu2 %vm575_vm3, %v3807_v7 }
 0x1d4   : > { %v2793_v54 = vadd.f32 %v2740_v46, %v2319_v15  ;;  %v2099_v58 = vadd.f32 %v2049_v25, %v4825_v33  ;;  %p4006_p1 = pneg %p4005_p0 }
 0x1d6   : > { %v3083_v44 = vadd.f32 %v3030_v30, %v2793_v54  ;;  %v2269_v55 = vpop.f32.mrf.mxu2  ;;  %p4011_p6 = pnand %p4010_p5, %p4006_p1 }
 0x1d7   : > { %v2320_v49 = vadd.f32 %v2269_v55, %v2098_v5 }
 0x1d8   : > { %v3111_v24 = vadd.f32 %v5194_v3, %v3083_v44  ;;  %3735 = vmatmul.msk.bf16.gmra.mxu3 %vm575_vm3, %v2679_v0  ;;  %v3033_v31 = vpop.f32.mrf.mxu0 }
 0x1da   : > { %v3135_v2 = vmax.f32 %v3111_v24, 0.0 }
 0x1db   : > { %v2743_v52 = vpop.f32.mrf.mxu3  ;;  %v2052_v29 = vpop.f32.mrf.mxu1  ;;  %3764 = vmatmul.msk.bf16.gmra.mxu0 %vm575_vm3, %v2969_v27 }
 0x1dc   : > { %v3821_v23 = vpack.c.bf16 %v3135_v2, %v3134_v41  ;;  %v2794_v19 = vadd.f32 %v2743_v52, %v2320_v49  ;;  %v2100_v63 = vadd.f32 %v2052_v29, %v4843_v6 }
 0x1de   : > { %3869 = vst [vmem:[%s5238_s5 + $0x10] sm:$0xff] %v3821_v23   ;;  %v2271_v45 = vpop.f32.mrf.mxu2  ;;  %v3084_v18 = vadd.f32 %v3033_v31, %v2794_v19 }
 0x1df   : > { %v2321_v38 = vadd.f32 %v2271_v45, %v2099_v58 }
 0x1e0   : > { %v3035_v35 = vpop.f32.mrf.mxu0  ;;  %v3112_v17 = vadd.f32 %v5194_v3, %v3084_v18 }
 0x1e2   : > { %v3136_v4 = vmax.f32 %v3112_v17, 0.0 }
 0x1e3   : > { %v2745_v51 = vpop.f32.mrf.mxu3  ;;  %v2054_v47 = vpop.f32.mrf.mxu1 }
 0x1e4   : > { %v2795_v1 = vadd.f32 %v2745_v51, %v2321_v38  ;;  %v2101_v50 = vadd.f32 %v2054_v47, %v4863_v57 }
 0x1e6   : > { %v3085_v10 = vadd.f32 %v3035_v35, %v2795_v1  ;;  %v2274_v48 = vpop.f32.mrf.mxu2 }
 0x1e7   : > { %v2322_v33 = vadd.f32 %v2274_v48, %v2100_v63 }
 0x1e8   : > { %v3113_v42 = vadd.f32 %v5194_v3, %v3085_v10  ;;  %v3038_v16 = vpop.f32.mrf.mxu0 }
 0x1ea   : > { %v3137_v14 = vmax.f32 %v3113_v42, 0.0 }
 0x1eb   : > { %v2748_v56 = vpop.f32.mrf.mxu3  ;;  %v2057_v32 = vpop.f32.mrf.mxu1 }
 0x1ec   : > { %v3826_v15 = vpack.c.bf16 %v3137_v14, %v3136_v4  ;;  %v2796_v7 = vadd.f32 %v2748_v56, %v2322_v33  ;;  %v2102_v59 = vadd.f32 %v2057_v32, %v4884_v22 }
 0x1ee   : > { %3870 = vst [vmem:[%s5238_s5 + $0x18] sm:$0xff] %v3826_v15   ;;  %v2276_v28 = vpop.f32.mrf.mxu2  ;;  %v3086_v36 = vadd.f32 %v3038_v16, %v2796_v7 }
 0x1ef   : > { %v2323_v30 = vadd.f32 %v2276_v28, %v2101_v50 }
 0x1f0   : > { %v3040_v12 = vpop.f32.mrf.mxu0  ;;  %v3114_v6 = vadd.f32 %v5194_v3, %v3086_v36 }
 0x1f2   : > { %v3138_v44 = vmax.f32 %v3114_v6, 0.0 }
 0x1f3   : > { %v2750_v43 = vpop.f32.mrf.mxu3  ;;  %v2059_v46 = vpop.f32.mrf.mxu1 }
 0x1f4   : > { %v2797_v25 = vadd.f32 %v2750_v43, %v2323_v30  ;;  %v2103_v41 = vadd.f32 %v2059_v46, %v4905_v61 }
 0x1f6   : > { %v3087_v54 = vadd.f32 %v3040_v12, %v2797_v25  ;;  %v2279_v0 = vpop.f32.mrf.mxu2 }
 0x1f7   : > { %v2324_v57 = vadd.f32 %v2279_v0, %v2102_v59 }
 0x1f8   : > { %v3115_v11 = vadd.f32 %v5194_v3, %v3087_v54  ;;  %v3043_v40 = vpop.f32.mrf.mxu0 }
 0x1fa   : > { %v3139_v55 = vmax.f32 %v3115_v11, 0.0 }
 0x1fb   : > { %v2753_v24 = vpop.f32.mrf.mxu3  ;;  %v2062_v5 = vpop.f32.mrf.mxu1 }
 0x1fc   : > { %v3831_v27 = vpack.c.bf16 %v3139_v55, %v3138_v44  ;;  %v2798_v31 = vadd.f32 %v2753_v24, %v2324_v57  ;;  %v2104_v18 = vadd.f32 %v2062_v5, %v4919_v53 }
 0x1fe   : > { %3871 = vst [vmem:[%s5238_s5 + $0x20] sm:$0xff] %v3831_v27   ;;  %v2281_v2 = vpop.f32.mrf.mxu2  ;;  %v3088_v29 = vadd.f32 %v3043_v40, %v2798_v31 }
 0x1ff   : > { %v2325_v49 = vadd.f32 %v2281_v2, %v2103_v41 }
 0x200   : > { %v3045_v52 = vpop.f32.mrf.mxu0  ;;  %v3116_v22 = vadd.f32 %v5194_v3, %v3088_v29 }
 0x202   : > { %v3140_v47 = vmax.f32 %v3116_v22, 0.0 }
 0x203   : > { %v2755_v23 = vpop.f32.mrf.mxu3  ;;  %v2064_v19 = vpop.f32.mrf.mxu1 }
 0x204   : > { %v2799_v58 = vadd.f32 %v2755_v23, %v2325_v49  ;;  %v2105_v63 = vadd.f32 %v2064_v19, %v4954_v60 }
 0x206   : > { %v3089_v45 = vadd.f32 %v3045_v52, %v2799_v58  ;;  %v2284_v38 = vpop.f32.mrf.mxu2 }
 0x207   : > { %v2326_v61 = vadd.f32 %v2284_v38, %v2104_v18 }
 0x208   : > { %v3117_v35 = vadd.f32 %v5194_v3, %v3089_v45  ;;  %v3048_v51 = vpop.f32.mrf.mxu0 }
 0x20a   : > { %v3141_v1 = vmax.f32 %v3117_v35, 0.0 }
 0x20b   : > { %v2758_v17 = vpop.f32.mrf.mxu3  ;;  %v2067_v10 = vpop.f32.mrf.mxu1 }
 0x20c   : > { %v3836_v48 = vpack.c.bf16 %v3141_v1, %v3140_v47  ;;  %v2800_v42 = vadd.f32 %v2758_v17, %v2326_v61  ;;  %v2106_v30 = vadd.f32 %v2067_v10, %v4975_v34 }
 0x20e   : > { %3872 = vst [vmem:[%s5238_s5 + $0x28] sm:$0xff] %v3836_v48   ;;  %v2286_v16 = vpop.f32.mrf.mxu2  ;;  %v3090_v33 = vadd.f32 %v3048_v51, %v2800_v42 }
 0x20f   : > { %v2327_v4 = vadd.f32 %v2286_v16, %v2105_v63 }
 0x210   : > { %v3050_v14 = vpop.f32.mrf.mxu0  ;;  %v3118_v53 = vadd.f32 %v5194_v3, %v3090_v33 }
 0x212   : > { %v3142_v36 = vmax.f32 %v3118_v53, 0.0 }
 0x213   : > { %v2760_v56 = vpop.f32.mrf.mxu3  ;;  %v2069_v32 = vpop.f32.mrf.mxu1 }
 0x214   : > { %v2801_v15 = vadd.f32 %v2760_v56, %v2327_v4  ;;  %v2107_v0 = vadd.f32 %v2069_v32, %v4993_v62 }
 0x216   : > { %v3091_v7 = vadd.f32 %v3050_v14, %v2801_v15  ;;  %v2289_v50 = vpop.f32.mrf.mxu2 }
 0x217   : > { %v2328_v60 = vadd.f32 %v2289_v50, %v2106_v30 }
 0x218   : > { %v3119_v28 = vadd.f32 %v5194_v3, %v3091_v7  ;;  %v3053_v12 = vpop.f32.mrf.mxu0 }
 0x21a   : > { %v3143_v43 = vmax.f32 %v3119_v28, 0.0 }
 0x21b   : > { %v2763_v46 = vpop.f32.mrf.mxu3  ;;  %v2072_v25 = vpop.f32.mrf.mxu1 }
 0x21c   : > { %v3841_v6 = vpack.c.bf16 %v3143_v43, %v3142_v36  ;;  %v2802_v54 = vadd.f32 %v2763_v46, %v2328_v60  ;;  %v2108_v41 = vadd.f32 %v2072_v25, %v5015_v39 }
 0x21e   : > { %3873 = vst [vmem:[%s5238_s5 + $0x30] sm:$0xff] %v3841_v6   ;;  %v2291_v11 = vpop.f32.mrf.mxu2  ;;  %v3092_v44 = vadd.f32 %v3053_v12, %v2802_v54 }
 0x21f   : > { %v2329_v59 = vadd.f32 %v2291_v11, %v2107_v0 }
 0x220   : > { %v3055_v40 = vpop.f32.mrf.mxu0  ;;  %v3120_v34 = vadd.f32 %v5194_v3, %v3092_v44 }
 0x222   : > { %v3144_v49 = vmax.f32 %v3120_v34, 0.0 }
 0x223   : > { %v2765_v55 = vpop.f32.mrf.mxu3  ;;  %v2074_v57 = vpop.f32.mrf.mxu1 }
 0x224   : > { %v2803_v24 = vadd.f32 %v2765_v55, %v2329_v59  ;;  %v2109_v22 = vadd.f32 %v2074_v57, %v5036_v26 }
 0x226   : > { %v3093_v5 = vadd.f32 %v3055_v40, %v2803_v24  ;;  %v2294_v27 = vpop.f32.mrf.mxu2 }
 0x227   : > { %v2330_v62 = vadd.f32 %v2294_v27, %v2108_v41 }
 0x228   : > { %v3121_v31 = vadd.f32 %v5194_v3, %v3093_v5  ;;  %v3058_v2 = vpop.f32.mrf.mxu0 }
 0x22a   : > { %v3145_v52 = vmax.f32 %v3121_v31, 0.0 }
 0x22b   : > { %v2768_v29 = vpop.f32.mrf.mxu3  ;;  %v2077_v23 = vpop.f32.mrf.mxu1 }
 0x22c   : > { %v3846_v19 = vpack.c.bf16 %v3145_v52, %v3144_v49  ;;  %v2804_v58 = vadd.f32 %v2768_v29, %v2330_v62  ;;  %v2110_v48 = vadd.f32 %v2077_v23, %v5048_v21 }
 0x22e   : > { %3874 = vst [vmem:[%s5238_s5 + $0x38] sm:$0xff] %v3846_v19   ;;  %v2296_v45 = vpop.f32.mrf.mxu2  ;;  %v3094_v18 = vadd.f32 %v3058_v2, %v2804_v58 }
 0x22f   : > { %v2331_v38 = vadd.f32 %v2296_v45, %v2109_v22 }
 0x230   : > { %v3060_v35 = vpop.f32.mrf.mxu0  ;;  %v3122_v39 = vadd.f32 %v5194_v3, %v3094_v18 }
 0x232   : > { %v3146_v63 = vmax.f32 %v3122_v39, 0.0 }
 0x233   : > { %v2770_v51 = vpop.f32.mrf.mxu3  ;;  %v2079_v47 = vpop.f32.mrf.mxu1 }
 0x234   : > { %v2805_v1 = vadd.f32 %v2770_v51, %v2331_v38  ;;  %v2111_v32 = vadd.f32 %v2079_v47, %v5076_v37 }
 0x236   : > { %v3095_v61 = vadd.f32 %v3060_v35, %v2805_v1  ;;  %v2299_v17 = vpop.f32.mrf.mxu2 }
 0x237   : > { %v2332_v26 = vadd.f32 %v2299_v17, %v2110_v48 }
 0x238   : > { %v3123_v10 = vadd.f32 %v5194_v3, %v3095_v61  ;;  %v3063_v42 = vpop.f32.mrf.mxu0 }
 0x23a   : > { %v3147_v16 = vmax.f32 %v3123_v10, 0.0 }
 0x23b   : > { %v2773_v4 = vpop.f32.mrf.mxu3  ;;  %v2082_v33 = vpop.f32.mrf.mxu1 }
 0x23c   : > { %v3851_v14 = vpack.c.bf16 %v3147_v16, %v3146_v63  ;;  %v2806_v56 = vadd.f32 %v2773_v4, %v2332_v26  ;;  %v2112_v46 = vadd.f32 %v2082_v33, %v5098_v8 }
 0x23e   : > { %3875 = vst [vmem:[%s5238_s5 + $0x40] sm:$0xff] %v3851_v14   ;;  %v2301_v15 = vpop.f32.mrf.mxu2  ;;  %v3096_v50 = vadd.f32 %v3063_v42, %v2806_v56 }
 0x23f   : > { %v2333_v53 = vadd.f32 %v2301_v15, %v2111_v32 }
 0x240   : > { %v3065_v7 = vpop.f32.mrf.mxu0  ;;  %v3124_v21 = vadd.f32 %v5194_v3, %v3096_v50 }
 0x242   : > { %v3148_v6 = vmax.f32 %v3124_v21, 0.0 }
 0x243   : > { %v2775_v28 = vpop.f32.mrf.mxu3  ;;  %v2084_v36 = vpop.f32.mrf.mxu1 }
 0x244   : > { %v2807_v30 = vadd.f32 %v2775_v28, %v2333_v53  ;;  %v2113_v40 = vadd.f32 %v2084_v36, %v5117_v13 }
 0x246   : > { %v3097_v12 = vadd.f32 %v3065_v7, %v2807_v30  ;;  %v2304_v43 = vpop.f32.mrf.mxu2 }
 0x247   : > { %v2334_v37 = vadd.f32 %v2304_v43, %v2112_v46 }
 0x248   : > { %v3125_v60 = vadd.f32 %v5194_v3, %v3097_v12  ;;  %v3068_v25 = vpop.f32.mrf.mxu0 }
 0x24a   : > { %v3149_v54 = vmax.f32 %v3125_v60, 0.0 }
 0x24b   : > { %v2778_v0 = vpop.f32.mrf.mxu3  ;;  %v2087_v57 = vpop.f32.mrf.mxu1 }
 0x24c   : > { %v3856_v11 = vpack.c.bf16 %v3149_v54, %v3148_v6  ;;  %v2808_v59 = vadd.f32 %v2778_v0, %v2334_v37  ;;  %v2114_v49 = vadd.f32 %v2087_v57, %v5136_v9 }
 0x24e   : > { %3876 = vst [vmem:[%s5238_s5 + $0x48] sm:$0xff] %v3856_v11   ;;  %v2306_v44 = vpop.f32.mrf.mxu2  ;;  %v3098_v34 = vadd.f32 %v3068_v25, %v2808_v59 }
 0x24f   : > { %v2335_v55 = vadd.f32 %v2306_v44, %v2113_v40 }
 0x250   : > { %v3070_v24 = vpop.f32.mrf.mxu0  ;;  %v3126_v27 = vadd.f32 %v5194_v3, %v3098_v34 }
 0x252   : > { %v3150_v52 = vmax.f32 %v3126_v27, 0.0 }
 0x253   : > { %v2780_v5 = vpop.f32.mrf.mxu3  ;;  %v2089_v29 = vpop.f32.mrf.mxu1 }
 0x254   : > { %v2809_v8 = vadd.f32 %v2780_v5, %v2335_v55  ;;  %v2115_v45 = vadd.f32 %v2089_v29, %v5163_v20 }
 0x256   : > { %v3099_v31 = vadd.f32 %v3070_v24, %v2809_v8  ;;  %v2309_v41 = vpop.f32.mrf.mxu2 }
 0x257   : > { %v2336_v62 = vadd.f32 %v2309_v41, %v2114_v49 }
 0x258   : > { %v3127_v2 = vadd.f32 %v5194_v3, %v3099_v31  ;;  %v3073_v23 = vpop.f32.mrf.mxu0 }
 0x25a   : > { %v3151_v13 = vmax.f32 %v3127_v2, 0.0 }
 0x25b   : > { %v2783_v19 = vpop.f32.mrf.mxu3 }
 0x25c   : > { %v3861_v58 = vpack.c.bf16 %v3151_v13, %v3150_v52  ;;  %v2810_v22 = vadd.f32 %v2783_v19, %v2336_v62 }
 0x25e   : > { %3877 = vst [vmem:[%s5238_s5 + $0x50] sm:$0xff] %v3861_v58   ;;  %v2311_v38 = vpop.f32.mrf.mxu2  ;;  %v3100_v18 = vadd.f32 %v3073_v23, %v2810_v22 }
 0x25f   : > { %v2337_v35 = vadd.f32 %v2311_v38, %v2115_v45 }
 0x260   : > { %v3075_v47 = vpop.f32.mrf.mxu0  ;;  %v3128_v1 = vadd.f32 %v5194_v3, %v3100_v18 }
 0x262   : > { %v3152_v61 = vmax.f32 %v3128_v1, 0.0 }
 0x263   : > { %v2785_v9 = vpop.f32.mrf.mxu3 }
 0x264   : > { %v2811_v51 = vadd.f32 %v2785_v9, %v2337_v35 }
 0x266   : > { %v3101_v39 = vadd.f32 %v3075_v47, %v2811_v51 }
 0x268   : > { %v3129_v20 = vadd.f32 %v5194_v3, %v3101_v39 }
 0x26a   : > { %v3153_v17 = vmax.f32 %v3129_v20, 0.0 }
 0x26c   : > { %v3866_v10 = vpack.c.bf16 %v3153_v17, %v3152_v61 }
 0x26e   : > { %3878 = vst [vmem:[%s5238_s5 + $0x58] sm:$0xff] %v3866_v10  }
 0x26f   : > { %4014 = shalt.err (!%p4011_p6)
}
 0x270   : > { %s4083_s29 = smov 64   ;;  %s4084_s5 = smov 4  }
 0x271   : > { %3885 = dma.vmem_to_hbm [thread:$0]  (%p4156_p3), %s3219_s11, 1536, %s3221_s20, %s3203_s21, %s4083_s29, %s4083_s29, %s4084_s5  }
 0x272 PF: > { %p3891_p7 = scmp.ge.s32.totalorder %s4081_s19, 2  ;;  %s3235_s9 = sand.u32 1, %s4053_s12  }
 0x273   : > { %s3236_s15 = scalar_lea.sflag [#allocation3], %s3235_s9 }
 0x274   : > { %p3888_p9 = pnand %p3891_p7, %p4165_p8 }
 0x276   : > { %p3889_p10 = pneg %p3888_p9 }
 0x278   : > { %4048 = dma.done.wait (%p3889_p10), %s3236_s15, 1536  }
 0x279   : > { %4050 = vsyncadd (%p3889_p10), %s3236_s15, 4294965760  ;;  %s16_s19 = sadd.s32 1, %s4081_s19   ;;  %s5382_s12 = smov %s4057_s13 }
 0x27a   : > { %p13_p11 = scmp.ge.s32.totalorder %s16_s19, 8   ;;  %s5383_s13 = smov %s4061_s14 }
 0x27b   : > { %s5384_s14 = smov %s4174_s30  ;;  %s5385_s15 = smov %s4073_s17 }
 0x27c   : > { %s5386_s16 = smov %s4077_s18  ;;  %s5387_s17 = smov %s5390_s22 }
 0x27d   : > { %s5388_s18 = smov %s5394_s23  ;;  %15 = sbr.rel (!%p13_p11) target bundleno = 5 (0x5), region = 84 }
 0x282   :  { %3242 = vsyncpa [#allocation3], 1 }
 0x283   :  { %3244 = vsyncpa [#allocation3 + $0x1], 1 }

</bundles_post_ra>
